<compile_context>
chip_gen: v6e
topology: v6e:2x2x1
jax: 0.10.0
libtpu: 0.0.40
codegen_flags: <defaults>
</compile_context>

<pallas_src>
from functools import partial

import jax
import jax.numpy as jnp
from jax.experimental import pallas as pl
from jax.experimental.pallas import tpu as pltpu


# --------------------------------------------------------------------------- #
# Kernel
# --------------------------------------------------------------------------- #
def _maxpool2d_kernel(x_ref, *rest, k, s, d, p, Ho, Wo, halo_rows):
    """Pool one NCHW block.

    x_ref    : (1, Cb, Hb, W)  input body rows for this output tile.
    halo_ref : (1, Cb, 8, W)   next 8 input rows (only present when H is tiled
               and windows overlap); the first `halo_rows` of them are used.
    o_ref    : (1, Cb, Ho, Wo) output tile.
    """
    if halo_rows > 0:
        halo_ref, o_ref = rest
    else:
        (o_ref,) = rest

    x = x_ref[0]                                          # (Cb, Hb, W)
    if halo_rows > 0:
        x = jnp.concatenate([x, halo_ref[0][:, :halo_rows, :]], axis=1)

    if p > 0:
        # PyTorch max-pool padding is equivalent to dtype-min padding: with
        # legal padding (p <= d * (k // 2)) every window contains at least one
        # real element, so the pad value is never selected.
        pad_val = (jnp.finfo(x.dtype).min
                   if jnp.issubdtype(x.dtype, jnp.floating)
                   else jnp.iinfo(x.dtype).min)
        cdim = x.shape[0]
        wpad = jnp.full((cdim, x.shape[1], p), pad_val, x.dtype)
        x = jnp.concatenate([wpad, x, wpad], axis=2)
        hpad = jnp.full((cdim, p, x.shape[2]), pad_val, x.dtype)
        x = jnp.concatenate([hpad, x, hpad], axis=1)

    Cb, Hin, Win = x.shape
    span = d * (k - 1)

    # ---- H direction (sublane axis): dense stride-1 pool over k taps -------
    hv = Hin - span
    hp = x[:, 0:hv, :]
    for ki in range(1, k):
        hp = jnp.maximum(hp, x[:, ki * d: ki * d + hv, :])

    # Stride-s row subsample, reshape-based (avoids strided slices).
    # TODO(synk): take the stride-s taps directly once Mosaic strided value
    # slices are guaranteed to lower; it halves the dense-pool VPU work.
    if s > 1:
        need = (Ho - 1) * s + 1
        hp = hp[:, :need, :]
        fill = jnp.zeros((Cb, Ho * s - need, Win), hp.dtype)   # never selected
        hp = jnp.concatenate([hp, fill], axis=1)
        hs = hp.reshape(Cb, Ho, s, Win)[:, :, 0, :]            # rows 0, s, 2s, ...
    else:
        hs = hp[:, :Ho, :]

    # ---- W direction (lane axis) --------------------------------------------
    if k == s and d == 1:
        # Non-overlapping windows (topaz 2x2/s2 pool): fused pool + subsample.
        out = jnp.max(hs[:, :, : Wo * s].reshape(Cb, Ho, Wo, s), axis=-1)
    else:
        wv = Win - span
        wp = hs[:, :, 0:wv]
        for kj in range(1, k):
            wp = jnp.maximum(wp, hs[:, :, kj * d: kj * d + wv])
        if s > 1:
            need = (Wo - 1) * s + 1
            wp = wp[:, :, :need]
            fill = jnp.zeros((Cb, Ho, Wo * s - need), wp.dtype)  # never selected
            wp = jnp.concatenate([wp, fill], axis=2)
            out = wp.reshape(Cb, Ho, Wo, s)[:, :, :, 0]          # cols 0, s, 2s, ...
        else:
            out = wp[:, :, :Wo]

    o_ref[0] = out


# --------------------------------------------------------------------------- #
# Tiling / wrapper
# --------------------------------------------------------------------------- #
_HALO_BLOCK_ROWS = 8           # sublane granularity of the halo fetch


def _divisors_desc(n):
    return [v for v in range(n, 0, -1) if n % v == 0]


def _vmem_budget():
    """(vmem_limit_bytes, per-block input budget) for this TPU generation."""
    cap = 128 * 1024 * 1024
    try:
        cap = pltpu.get_tpu_info().vmem_capacity_bytes
    except Exception:
        pass
    vmem_limit = min(96 * 1024 * 1024, (cap * 3) // 4)   # ~48 MiB on v7x parts
    return vmem_limit, vmem_limit // 8                   # 2x in + out + temps


def _choose_tiles(N, C, H, W, Ho, s, halo, itemsize, in_budget, allow_h_tiling):
    """Pick (Cb, Ho_tile) so one input block fits the VMEM budget."""
    if allow_h_tiling:
        ho_opts = [t for t in _divisors_desc(Ho) if t == Ho or t % 8 == 0]
    else:
        ho_opts = [Ho]

    def in_rows(t):
        if t == Ho:
            return H
        return s * t + (_HALO_BLOCK_ROWS if halo > 0 else 0)

    def blk_bytes(cb, t):
        return cb * in_rows(t) * W * itemsize

    best = None
    for cb in _divisors_desc(C):
        for t in ho_opts:                       # descending: first fit = largest
            if blk_bytes(cb, t) <= in_budget:
                if best is None or blk_bytes(cb, t) > blk_bytes(*best):
                    best = (cb, t)
                break
    if best is None:
        # TODO(synk): also tile W for pathological shapes (huge W, overlapping
        # windows, C == 1); fall back to the smallest legal block for now.
        best = (1, min(ho_opts))
    cb, t = best

    # v7x has two TensorCores: keep at least two parallel grid steps.
    if N * (C // cb) * (Ho // t) < 2:
        if C > 1:
            cb = C // min(v for v in range(2, C + 1) if C % v == 0)
        else:
            smaller = [tt for tt in ho_opts if tt < t]
            if smaller:
                t = smaller[0]
    return cb, t


def max_pool_2d(x, kernel_size, stride=1, padding=0, dilation=1,
                _force_ho_tile=None):
    """nn.MaxPool2d(kernel_size, stride, padding, dilation) on NCHW input."""
    N, C, H, W = x.shape
    k, s, d, p = kernel_size, stride, dilation, padding
    span = d * (k - 1)
    Ho = (H + 2 * p - span - 1) // s + 1
    Wo = (W + 2 * p - span - 1) // s + 1
    assert Ho > 0 and Wo > 0, "pooling window larger than (padded) input"

    # Extra input rows a tile needs beyond its s*Ho_tile body rows.
    halo = max(0, span - (s - 1))
    # TODO(synk): per-tile edge masking so padded inputs can also be H-tiled.
    allow_h_tiling = (p == 0) and (halo <= _HALO_BLOCK_ROWS)

    vmem_limit, in_budget = _vmem_budget()
    Cb, Ho_t = _choose_tiles(N, C, H, W, Ho, s, halo, x.dtype.itemsize,
                             in_budget, allow_h_tiling)
    if _force_ho_tile is not None:              # test hook: force H tiling
        assert allow_h_tiling and Ho % _force_ho_tile == 0
        assert _force_ho_tile == Ho or _force_ho_tile % 8 == 0
        Ho_t = _force_ho_tile

    tiled_h = Ho_t < Ho
    Hb = s * Ho_t if tiled_h else H             # input body rows per block
    use_halo = tiled_h and halo > 0

    kernel = partial(_maxpool2d_kernel, k=k, s=s, d=d, p=p,
                     Ho=Ho_t, Wo=Wo, halo_rows=halo if use_halo else 0)

    in_specs = [pl.BlockSpec((1, Cb, Hb, W), lambda n, c, h: (n, c, h, 0))]
    operands = [x]
    if use_halo:
        hb_blocks = Hb // _HALO_BLOCK_ROWS      # Hb is a multiple of 8 here
        in_specs.append(
            pl.BlockSpec((1, Cb, _HALO_BLOCK_ROWS, W),
                         lambda n, c, h: (n, c, (h + 1) * hb_blocks, 0)))
        operands.append(x)                      # same array, small halo fetch

    return pl.pallas_call(
        kernel,
        out_shape=jax.ShapeDtypeStruct((N, C, Ho, Wo), x.dtype),
        grid=(N, C // Cb, Ho // Ho_t),
        in_specs=in_specs,
        out_specs=pl.BlockSpec((1, Cb, Ho_t, Wo), lambda n, c, h: (n, c, h, 0)),
        compiler_params=pltpu.CompilerParams(
            dimension_semantics=("parallel", "parallel", "parallel"),
            vmem_limit_bytes=vmem_limit,
        ),
    )(*operands)


class MaxPool:
    """JAX/Pallas mirror of topaz MaxPool (forward = self.pool(x))."""

    def __init__(self, kernel_size: int, stride: int = 1, dims: int = 2):
        self.kernel_size = kernel_size
        self.stride = stride
        self.og_stride = stride
        self.dilation = 1
        self.padding = 0
        self.dims = dims

    def set_padding(self, pad: bool):
        self.padding = self.dilation * (self.kernel_size // 2) if pad else 0

    def fill(self, stride: int):
        self.dilation = stride
        self.padding = self.padding * stride
        self.stride = 1
        return self.og_stride

    def unfill(self):
        self.padding = self.padding // self.dilation
        self.dilation = 1
        self.stride = self.og_stride

    def __call__(self, x):
        if self.dims == 3:
            # TODO(synk): 3-D max pooling (nn.MaxPool3d) path not implemented.
            raise NotImplementedError("dims=3 MaxPool3d not implemented")
        return max_pool_2d(x, self.kernel_size, stride=self.stride,
                           padding=self.padding, dilation=self.dilation)


# --------------------------------------------------------------------------- #
# Self-check
# --------------------------------------------------------------------------- #
def _reference(x, k, s, p, d):
    neg = -jnp.inf
    if p > 0:
        x = jnp.pad(x, ((0, 0), (0, 0), (p, p), (p, p)), constant_values=neg)
    return jax.lax.reduce_window(
        x, neg, jax.lax.max,
        window_dimensions=(1, 1, k, k),
        window_strides=(1, 1, s, s),
        padding="VALID",
        window_dilation=(1, 1, d, d),
    )


if __name__ == "__main__":
    key = jax.random.PRNGKey(0)
    x = jax.random.normal(key, (2, 4, 16, 16), dtype=jnp.float32)

    # 1) topaz default downsampling pool: MaxPool(2, stride=2).
    y = MaxPool(2, stride=2)(x)
    jax.block_until_ready(y)
    assert y.shape == (2, 4, 8, 8), y.shape
    assert jnp.allclose(y, _reference(x, 2, 2, 0, 1)), "mismatch k=2 s=2"

    # 2) MaxPool(3) with the module's default stride=1.
    y = MaxPool(3, stride=1)(x)
    jax.block_until_ready(y)
    assert y.shape == (2, 4, 14, 14), y.shape
    assert jnp.allclose(y, _reference(x, 3, 1, 0, 1)), "mismatch k=3 s=1"

    # 3) overlapping-window ResNet pool: MaxPool(3, stride=2).
    y = MaxPool(3, stride=2)(x)
    jax.block_until_ready(y)
    assert y.shape == (2, 4, 7, 7), y.shape
    assert jnp.allclose(y, _reference(x, 3, 2, 0, 1)), "mismatch k=3 s=2"

    # 4) exercise H tiling + halo fetch on a slightly larger input.
    x2 = jax.random.normal(jax.random.PRNGKey(0), (1, 3, 33, 48), jnp.float32)
    y2 = max_pool_2d(x2, 3, stride=2, _force_ho_tile=8)
    jax.block_until_ready(y2)
    assert y2.shape == (1, 3, 16, 23), y2.shape
    assert jnp.allclose(y2, _reference(x2, 3, 2, 0, 1)), "mismatch tiled halo"

    print("KERNEL_OK")
</pallas_src>

<mosaic_0001>
module attributes {stable_mosaic.version = 11 : i64} {
  func.func @_maxpool2d_kernel(%arg0: i32, %arg1: i32, %arg2: i32, %arg3: memref<1x4x16x16xf32, #tpu.memory_space<vmem>>, %arg4: memref<1x4x8x8xf32, #tpu.memory_space<vmem>>) attributes {dimension_semantics = [#tpu.dimension_semantics<parallel>, #tpu.dimension_semantics<parallel>, #tpu.dimension_semantics<parallel>], iteration_bounds = array<i64: 2, 1, 1>, scalar_prefetch = 0 : i64, scratch_operands = 0 : i64, tpu.core_type = #tpu.core_type<tc>, window_params = [{transform_indices = @transform_0, window_bounds = array<i64: 1, 4, 16, 16>}, {transform_indices = @transform_1, window_bounds = array<i64: 1, 4, 8, 8>}]} {
    %c0 = arith.constant 0 : index
    %c0_0 = arith.constant 0 : index
    %c0_1 = arith.constant 0 : index
    %c0_2 = arith.constant 0 : index
    %0 = vector.load %arg3[%c0, %c0_0, %c0_1, %c0_2] : memref<1x4x16x16xf32, #tpu.memory_space<vmem>>, vector<1x4x16x16xf32>
    %1 = vector.shape_cast %0 : vector<1x4x16x16xf32> to vector<4x16x16xf32>
    %2 = vector.extract_strided_slice %1 {offsets = [0, 0, 0], sizes = [4, 15, 16], strides = [1, 1, 1]} : vector<4x16x16xf32> to vector<4x15x16xf32>
    %3 = vector.extract_strided_slice %1 {offsets = [0, 1, 0], sizes = [4, 15, 16], strides = [1, 1, 1]} : vector<4x16x16xf32> to vector<4x15x16xf32>
    %4 = arith.maximumf %2, %3 : vector<4x15x16xf32>
    %cst = arith.constant 0.000000e+00 : f32
    %5 = vector.broadcast %cst : f32 to vector<4x1x16xf32>
    %6 = tpu.concatenate %4, %5 in 1 : vector<4x15x16xf32>, vector<4x1x16xf32> -> vector<4x16x16xf32>
    %7 = vector.shape_cast %6 : vector<4x16x16xf32> to vector<4x8x2x16xf32>
    %8 = vector.extract_strided_slice %7 {offsets = [0, 0, 0, 0], sizes = [4, 8, 1, 16], strides = [1, 1, 1, 1]} : vector<4x8x2x16xf32> to vector<4x8x1x16xf32>
    %9 = vector.shape_cast %8 : vector<4x8x1x16xf32> to vector<4x8x16xf32>
    %10 = vector.shape_cast %9 : vector<4x8x16xf32> to vector<4x8x8x2xf32>
    %cst_3 = arith.constant dense<0xFF800000> : vector<4x8x8xf32>
    %11 = vector.multi_reduction <maximumf>, %10, %cst_3 [3] : vector<4x8x8x2xf32> to vector<4x8x8xf32>
    %c0_4 = arith.constant 0 : index
    %c0_5 = arith.constant 0 : index
    %c0_6 = arith.constant 0 : index
    %c0_7 = arith.constant 0 : index
    %12 = vector.load %arg4[%c0_4, %c0_5, %c0_6, %c0_7] : memref<1x4x8x8xf32, #tpu.memory_space<vmem>>, vector<1x4x8x8xf32>
    %13 = vector.shape_cast %12 : vector<1x4x8x8xf32> to vector<4x8x8xf32>
    %14 = vector.shape_cast %11 : vector<4x8x8xf32> to vector<1x4x8x8xf32>
    tpu.vector_store %arg4[%c0_4, %c0_5, %c0_6, %c0_7], %14 {strides = array<i32>} : memref<1x4x8x8xf32, #tpu.memory_space<vmem>>, vector<1x4x8x8xf32>,
    return
  }
  func.func @transform_0(%arg0: i32, %arg1: i32, %arg2: i32) -> (i32, i32, i32, i32) {
    %c0_i32 = arith.constant 0 : i32
    %c0_i32_0 = arith.constant 0 : i32
    return %arg0, %arg1, %arg2, %c0_i32 : i32, i32, i32, i32
  }
  func.func @transform_1(%arg0: i32, %arg1: i32, %arg2: i32) -> (i32, i32, i32, i32) {
    %c0_i32 = arith.constant 0 : i32
    %c0_i32_0 = arith.constant 0 : i32
    return %arg0, %arg1, %arg2, %c0_i32 : i32, i32, i32, i32
  }
}

</mosaic_0001>

<bundles_post_ra>
// kernel: tpu_custom_call.1
= control target key start
LH: loop header
LB: loop body
LE: loop exit
PB: predicated region body
PF: predicated region fallthrough
CT: control target
= control target key end

     0   :  { %6 = vsyncpa [#allocation3], 0  ;;  %s5276_s0 = inlined_call_operand.hbm [shape: f32[2,4,16,16], index: 0, kind: input, shape index: {}]   ;;  %s5277_s1 = inlined_call_operand.hbm [shape: f32[2,4,8,8], index: 1, kind: output, shape index: {}]  }
   0x1   :  { %8 = vsyncpa [#allocation3 + $0x1], 0 }
   0x2   :  { %9 = vsyncpa [#allocation4], 0 }
   0x3   :  { %11 = vsyncpa [#allocation4 + $0x1], 0  ;;  %s3435_s6 = smov 0   ;;  %s3437_s7 = smov 0  }
   0x4   :  { %s3439_s8 = smov 0   ;;  %s3441_s9 = smov 0  }
   0x5   :  { %s3443_s10 = smov 0   ;;  %s3445_s11 = smov 0  }
   0x6 LB: > { %s3208_s12 = sadd.s32 4294967295, %s3408_s11   ;;  %s3209_s13 = sadd.s32 4294967294, %s3408_s11   ;;  %s3408_s11 = sphi %s3445_s11, %s17_s11   ;;  %s3404_s10 = sphi %s3443_s10, %s5646_s10   ;;  %s3400_s9 = sphi %s3441_s9, %s5645_s9   ;;  %s3396_s8 = sphi %s3439_s8, %s5644_s8   ;;  %s3392_s7 = sphi %s3437_s7, %s5643_s7   ;;  %s3388_s6 = sphi %s3435_s6, %s5642_s6  }
   0x7   : > { %s36_s14 = sadd.s32 1, %s3404_s10  ;;  %s47_s15 = sadd.s32 1, %s3396_s8 }
   0x8   : > { %p38_p0 = scmp.ge.s32.totalorder %s36_s14, 2  ;;  %p54_p1 = scmp.ne.s32.totalorder %s3396_s8, %s3392_s7 }
   0x9   : > { %p55_p2 = scmp.eq.s32.totalorder %s3408_s11, 0  ;;  %p60_p3 = scmp.ne.s32.totalorder %s3392_s7, %s3388_s6 }
   0xa   : > { %s5648_s14 = smov (%p38_p0, %s36_s14), 0  ;;  %p61_p5 = scmp.eq.s32.totalorder %s3208_s12, 0 }
   0xb   : > { %p3476_p4 = por %p55_p2, %p54_p1  ;;  %s40_s17 = ssub.s32 %s3404_s10, %s5648_s14 }
   0xc   : > { %p88_p6 = scmp.eq.s32.totalorder %s3208_s12, 1  ;;  %p45_p7 = scmp.eq.s32.totalorder %s40_s17, 0 }
   0xd   : > { %p3482_p8 = por %p61_p5, %p60_p3  ;;  %p94_p10 = scmp.eq.s32.totalorder %s3209_s13, 1 }
   0xe   : > { %p3486_p9 = por %p88_p6, %p54_p1  ;;  %p3237_p13 = scmp.lt.s32.totalorder %s3408_s11, 2 }
   0xf   : > { %s3491_s20 = scalar_select %p45_p7, %s3396_s8, %s47_s15  }
  0x10   : > { %p3493_p11 = por %p94_p10, %p60_p3  ;;  %s114_s22 = sand.u32 1, %s3396_s8  }
  0x11   : > { %s3212_s23 = sshll.u32 %s114_s22, 6  ;;  %s3223_s24 = sshll.u32 %s3404_s10, 10 }
  0x12   : > { %s129_s27 = scalar_lea.hbm %s5276_s0, %s3223_s24  ;;  %s118_s28 = scalar_lea.vmem [#allocation2], %s3212_s23 }
  0x13   : > { %s130_s29 = sshll.u32 %s118_s28, 4  ;;  %p3506_p0 = pnand %p3237_p13, %p3476_p4  ;;  %s131_s29 = int_to_ptr.vmem [resolvable:$true] %s130_s29 }
  0x14   : > { %p3215_p1 = scmp.ge.s32.totalorder %s3408_s11, 1  ;;  %s115_s2 = scalar_lea.sflag [#allocation3], %s114_s22 }
  0x15   : > { %p3302_p2 = pneg %p3506_p0  ;;  %s3313_s3 = scalar_lea.vmem %s131_s29, 1024 }
  0x16   : > { %p3314_p3 = scmp.ne.s32.totalorder %s131_s29, %s3313_s3  ;;  %s3410_s4 = smov [#allocation2]  }
  0x17   : > { %s3318_s5 = sshll.u32 %s3410_s4, 4  ;;  %s3319_s5 = int_to_ptr.vmem [resolvable:$false] %s3318_s5 }
  0x18   : > { %p3316_p5 = pnand %p3314_p3, %p3302_p2  ;;  %s3320_s12 = scalar_lea.vmem %s3319_s5, 2048 }
  0x19   : > { %p3321_p7 = scmp.lt.s32.totalorder %s131_s29, %s3319_s5  ;;  %p3322_p10 = scmp.lt.s32.totalorder %s3320_s12, %s3313_s3 }
  0x1a   : > { %p3317_p6 = pneg %p3316_p5 }
  0x1b   : > { %p3323_p12 = por %p3322_p10, %p3321_p7 }
  0x1d   : > { %p3324_p4 = pnand %p3323_p12, %p3317_p6 }
  0x1f   : > { %3327 = shalt.err (!%p3324_p4)
}
  0x20   : > { %s3411_s13 = smov 128   ;;  %s3412_s15 = smov 8  }
  0x21   : > { %3232 = dma.hbm_to_vmem [thread:$0]  (!%p3506_p0), %s129_s27, 1024, %s131_s29, %s115_s2, %s3411_s13, %s3411_s13, %s3412_s15  }
  0x22   : > { %p138_p13 = scmp.lt.s32.totalorder %s3408_s11, 3 }
  0x24   : > { %p139_p2 = pnand %p3215_p1, %p138_p13 }
  0x26   : > { %142 = sbr.rel (%p139_p2) target bundleno = 782 (0x30e), region = 24 }
  0x2b   : > { %s3519_s16 = sand.u32 1, %s3392_s7  }
  0x2c   : > { %s3216_s17 = sshll.u32 %s3519_s16, 6  ;;  %s145_s22 = scalar_lea.sflag [#allocation3], %s3519_s16 }
  0x2d   : > { %s3523_s23 = scalar_lea.vmem [#allocation2], %s3216_s17 }
  0x2e   : > { %3379 = dma.done.wait (%p3482_p8), %s145_s22, 1024  }
  0x2f   : > { %3381 = vsyncadd (%p3482_p8), %s145_s22, 4294966272  ;;  %v3413_v0 = vmov 1983009808   ;;  %v5278_v2 = vlaneseq  ;;  %v170_v5 = vld [vmem:[%s3523_s23] sm:$0xff]  ;;  %v171_v6 = vld [vmem:[%s3523_s23 + $0x8] sm:$0xff]  ;;  %vm186_vm0 = vcmask 1046528  }
  0x30   : > { %v229_v1 = vunpack.c.l.s4 %v3413_v0  ;;  %v172_v7 = vld [vmem:[%s3523_s23 + $0x10] sm:$0xff]  ;;  %v187_v8 = vrot.slane %v170_v5, 1  ;;  %v188_v9 = vrot.slane %v171_v6, 1  ;;  %v173_v10 = vld [vmem:[%s3523_s23 + $0x18] sm:$0xff]  ;;  %s3414_s18 = smov 126   ;;  %v174_v33 = vld [vmem:[%s3523_s23 + $0x20] sm:$0xff] }
  0x31   : > { %v3530_v4 = vshrl.u32 %v5278_v2, 7  ;;  %v190_v11 = vrot.slane %v172_v7, 1  ;;  %v191_v13 = vrot.slane %v173_v10, 1  ;;  %v175_v34 = vld [vmem:[%s3523_s23 + $0x28] sm:$0xff]  ;;  %v193_v38 = vrot.slane %v174_v33, 1  ;;  %v176_v51 = vld [vmem:[%s3523_s23 + $0x30] sm:$0xff] }
  0x32   : > { %v230_v3 = vunpack.c.0.s8 %v229_v1  ;;  %v189_v14 = vsel %vm186_vm0, %v187_v8, %v188_v9  ;;  %v208_v15 = vmax.f32 %v171_v6, %v188_v9  ;;  %v194_v39 = vrot.slane %v175_v34, 1  ;;  %v177_v52 = vld [vmem:[%s3523_s23 + $0x38] sm:$0xff]  ;;  %s3415_s24 = smov 124   ;;  %s3416_s25 = smov 122  }
  0x33   : > { %5299 = vst [vmem:[#allocation8_spill] sm:$0xff] %v3530_v4  ;;  %v207_v16 = vmax.f32 %v170_v5, %v189_v14  ;;  %v192_v17 = vsel %vm186_vm0, %v190_v11, %v191_v13  ;;  %v210_v32 = vmax.f32 %v173_v10, %v191_v13  ;;  %v196_v56 = vrot.slane %v176_v51, 1  ;;  %s3417_s26 = smov 120   ;;  %s3418_s27 = smov 118  }
  0x34   : > { %v3537_v12 = vsub.s32 %v230_v3, %v3530_v4  ;;  %v215_v18 = vsel %vm186_vm0, %v208_v15, 0.0  ;;  %v209_v22 = vmax.f32 %v172_v7, %v192_v17  ;;  %v195_v43 = vsel %vm186_vm0, %v193_v38, %v194_v39  ;;  %s3419_s28 = smov 116   ;;  %s3420_s29 = smov 114  }
  0x35   : > { %v227_v20 = vcombine.high %v207_v16, %v207_v16  ;;  %v244_v27 = vcombine.high %v215_v18, %v215_v18  ;;  %v216_v37 = vsel %vm186_vm0, %v210_v32, 0.0  ;;  %v211_v46 = vmax.f32 %v174_v33, %v195_v43  ;;  %s3217_s30 = sshll.u32 %s3519_s16, 5  ;;  %s3224_s4 = sshll.u32 %s3400_s9, 9 }
  0x36   : > { %5300 = vst [vmem:[#allocation9_spill] sm:$0xff] %v3537_v12  ;;  %v3543_v19 = vrot.slane %v207_v16, %v3537_v12  ;;  %v3546_v21 = vrot.slane %v215_v18, %v3537_v12  ;;  %v3560_v25 = vrot.slane %v209_v22, %v3537_v12  ;;  %v261_v31 = vcombine.high %v209_v22, %v209_v22  ;;  %s166_s2 = scalar_lea.vmem [#allocation5], %s3217_s30  ;;  %s5223_s12 = scalar_lea.hbm %s5277_s1, %s3224_s4 }
  0x37   : > { %v3551_v23 = vrot.slane %v227_v20, %v3537_v12  ;;  %v3583_v30 = vrot.slane %v244_v27, %v3537_v12  ;;  %v3608_v41 = vrot.slane %v216_v37, %v3537_v12  ;;  %v278_v42 = vcombine.high %v216_v37, %v216_v37  ;;  %s3115_s3 = sshll.u32 %s166_s2, 4  ;;  %s3099_s13 = scalar_lea.sflag [#allocation4], %s3519_s16  ;;  %s5213_s3 = int_to_ptr.vmem [resolvable:$true] %s3115_s3 }
  0x38   : > { %395 = vrot.lane.b32.xlu0 %v3543_v19, %s3414_s18  ;;  %v3557_v24 = vcombine.high %v3546_v21, %v3546_v21  ;;  %v3568_v26 = vcombine.high %v3560_v25, %v3560_v25  ;;  %v3574_v28 = vcombine.high %v3543_v19, %v3543_v19  ;;  %v3596_v36 = vrot.slane %v261_v31, %v3537_v12  ;;  %s3328_s15 = scalar_lea.vmem %s5213_s3, 512  ;;  %s3422_s17 = smov [#allocation5]  }
  0x39   : > { %399 = vrot.lane.b32.xlu1 %v3551_v23, %s3414_s18  ;;  %v3580_v29 = vcombine.high %v3551_v23, %v3551_v23  ;;  %v3593_v35 = vcombine.high %v3583_v30, %v3583_v30  ;;  %v3617_v44 = vcombine.high %v3608_v41, %v3608_v41  ;;  %v3620_v45 = vrot.slane %v278_v42, %v3537_v12  ;;  %p3329_p8 = scmp.ne.s32.totalorder %s5213_s3, %s3328_s15  ;;  %s3332_s22 = sshll.u32 %s3422_s17, 4  ;;  %s3333_s22 = int_to_ptr.vmem [resolvable:$false] %s3332_s22 }
  0x3a   : > { %v3605_v40 = vcombine.high %v3596_v36, %v3596_v36  ;;  %v3631_v48 = vrot.slane %v211_v46, %v3537_v12  ;;  %v295_v49 = vcombine.high %v211_v46, %v211_v46  ;;  %v212_v50 = vmax.f32 %v175_v34, %v194_v39  ;;  %s3334_s23 = scalar_lea.vmem %s3333_s22, 1024  ;;  %p3335_p1 = scmp.lt.s32.totalorder %s5213_s3, %s3333_s22 }
  0x3b   : > { %v3628_v47 = vcombine.high %v3620_v45, %v3620_v45  ;;  %v197_v57 = vrot.slane %v177_v52, 1  ;;  %vm2795_vm1 = vcmask 15360   ;;  %vm3054_vm2 = vcmask 1041409   ;;  %p3330_p12 = pnand %p3329_p8, %p3486_p9  ;;  %p3336_p3 = scmp.lt.s32.totalorder %s3334_s23, %s3328_s15 }
  0x3c   : > { %403 = vrot.lane.b32.xlu0 %v3546_v21, %s3414_s18  ;;  %v3641_v53 = vcombine.high %v3631_v48, %v3631_v48  ;;  %v3644_v54 = vrot.slane %v295_v49, %v3537_v12  ;;  %v217_v55 = vsel %vm186_vm0, %v212_v50, 0.0  ;;  %vm3056_vm3 = vcmask 1042434  }
  0x3d   : > { %405 = vrot.lane.b32.xlu1 %v3557_v24, %s3414_s18  ;;  %v3656_v59 = vrot.slane %v217_v55, %v3537_v12  ;;  %v312_v60 = vcombine.high %v217_v55, %v217_v55  ;;  %v198_v61 = vsel %vm186_vm0, %v196_v56, %v197_v57  ;;  %v214_v6 = vmax.f32 %v177_v52, %v197_v57  ;;  %p3331_p0 = pneg %p3330_p12  ;;  %p3337_p5 = por %p3336_p3, %p3335_p1 }
  0x3e   : > { %v3653_v58 = vcombine.high %v3644_v54, %v3644_v54  ;;  %v213_v0 = vmax.f32 %v176_v51, %v198_v61  ;;  %vm3058_vm4 = vcmask 1043459   ;;  %vm3060_vm5 = vcmask 1044484  }
  0x3f   : > { %v3665_v62 = vcombine.high %v3656_v59, %v3656_v59  ;;  %v3668_v63 = vrot.slane %v312_v60, %v3537_v12  ;;  %v218_v9 = vsel %vm186_vm0, %v214_v6, 0.0  ;;  %vm3062_vm6 = vcmask 1045509   ;;  %p3338_p6 = pnand %p3337_p5, %p3331_p0 }
  0x40   : > { %411 = vrot.lane.b32.xlu0 %v3560_v25, %s3414_s18  ;;  %v3679_v3 = vrot.slane %v213_v0, %v3537_v12  ;;  %v329_v5 = vcombine.high %v213_v0, %v213_v0  ;;  %v3702_v11 = vrot.slane %v218_v9, %v3537_v12  ;;  %v346_v13 = vcombine.high %v218_v9, %v218_v9 }
  0x41   : > { %413 = vrot.lane.b32.xlu1 %v3568_v26, %s3414_s18  ;;  %v3676_v1 = vcombine.high %v3668_v63, %v3668_v63  ;;  %vm3064_vm7 = vcmask 1046534   ;;  %vm3066_vm8 = vcmask 1047559   ;;  %vm3093_vm9 = vcmask 64512  }
  0x42   : > { %v3687_v7 = vcombine.high %v3679_v3, %v3679_v3  ;;  %v3690_v8 = vrot.slane %v329_v5, %v3537_v12  ;;  %5302 = vst [vmem:[#allocation11_spill] sm:$0xff] %v3702_v11  ;;  %v3710_v14 = vcombine.high %v3702_v11, %v3702_v11  ;;  %v3713_v15 = vrot.slane %v346_v13, %v3537_v12 }
  0x44   : > { %397 = vrot.lane.b32.xlu0 %v3574_v28, %s3414_s18  ;;  %v3699_v10 = vcombine.high %v3690_v8, %v3690_v8  ;;  %5303 = vst [vmem:[#allocation12_spill] sm:$0xff] %v3710_v14  ;;  %5304 = vst [vmem:[#allocation13_spill] sm:$0xff] %v3713_v15  ;;  %v3721_v16 = vcombine.high %v3713_v15, %v3713_v15 }
  0x45   : > { %401 = vrot.lane.b32.xlu1 %v3580_v29, %s3414_s18 }
  0x46   : > { %5301 = vst [vmem:[#allocation10_spill] sm:$0xff] %v3699_v10  ;;  %5305 = vst [vmem:[#allocation14_spill] sm:$0xff] %v3721_v16 }
  0x48   : > { %407 = vrot.lane.b32.xlu0 %v3583_v30, %s3414_s18 }
  0x49   : > { %409 = vrot.lane.b32.xlu1 %v3593_v35, %s3414_s18 }
  0x4c   : > { %415 = vrot.lane.b32.xlu0 %v3596_v36, %s3414_s18 }
  0x4d   : > { %417 = vrot.lane.b32.xlu1 %v3605_v40, %s3414_s18 }
  0x50   : > { %419 = vrot.lane.b32.xlu0 %v3608_v41, %s3414_s18 }
  0x51   : > { %421 = vrot.lane.b32.xlu1 %v3617_v44, %s3414_s18 }
  0x54   : > { %423 = vrot.lane.b32.xlu0 %v3620_v45, %s3414_s18 }
  0x55   : > { %425 = vrot.lane.b32.xlu1 %v3628_v47, %s3414_s18 }
  0x58   : > { %427 = vrot.lane.b32.xlu0 %v3631_v48, %s3414_s18 }
  0x59   : > { %429 = vrot.lane.b32.xlu1 %v3641_v53, %s3414_s18 }
  0x5c   : > { %431 = vrot.lane.b32.xlu0 %v3644_v54, %s3414_s18 }
  0x5d   : > { %433 = vrot.lane.b32.xlu1 %v3653_v58, %s3414_s18 }
  0x60   : > { %435 = vrot.lane.b32.xlu0 %v3656_v59, %s3414_s18 }
  0x61   : > { %437 = vrot.lane.b32.xlu1 %v3665_v62, %s3414_s18 }
  0x64   : > { %439 = vrot.lane.b32.xlu0 %v3668_v63, %s3414_s18 }
  0x65   : > { %441 = vrot.lane.b32.xlu1 %v3676_v1, %s3414_s18 }
  0x68   : > { %443 = vrot.lane.b32.xlu0 %v3679_v3, %s3414_s18 }
  0x69   : > { %445 = vrot.lane.b32.xlu1 %v3687_v7, %s3414_s18 }
  0x6c   : > { %447 = vrot.lane.b32.xlu0 %v3690_v8, %s3414_s18 }
  0x6d   : > { %449 = vrot.lane.b32.xlu1 %v3699_v10, %s3414_s18 }
  0x70   : > { %451 = vrot.lane.b32.xlu0 %v3702_v11, %s3414_s18 }
  0x71   : > { %453 = vrot.lane.b32.xlu1 %v3710_v14, %s3414_s18 }
  0x74   : > { %455 = vrot.lane.b32.xlu0 %v3713_v15, %s3414_s18 }
  0x75   : > { %457 = vrot.lane.b32.xlu1 %v3721_v16, %s3414_s18 }
  0x78   : > { %491 = vrot.lane.b32.xlu0 %v3543_v19, %s3415_s24 }
  0x79   : > { %493 = vrot.lane.b32.xlu1 %v3574_v28, %s3415_s24 }
  0x7c   : > { %495 = vrot.lane.b32.xlu0 %v3551_v23, %s3415_s24 }
  0x7d   : > { %497 = vrot.lane.b32.xlu1 %v3580_v29, %s3415_s24 }
  0x80   : > { %499 = vrot.lane.b32.xlu0 %v3546_v21, %s3415_s24 }
  0x81   : > { %501 = vrot.lane.b32.xlu1 %v3557_v24, %s3415_s24 }
  0x84   : > { %503 = vrot.lane.b32.xlu0 %v3583_v30, %s3415_s24 }
  0x85   : > { %505 = vrot.lane.b32.xlu1 %v3593_v35, %s3415_s24 }
  0x88   : > { %507 = vrot.lane.b32.xlu0 %v3560_v25, %s3415_s24 }
  0x89   : > { %509 = vrot.lane.b32.xlu1 %v3568_v26, %s3415_s24 }
  0x8c   : > { %511 = vrot.lane.b32.xlu0 %v3596_v36, %s3415_s24 }
  0x8d   : > { %513 = vrot.lane.b32.xlu1 %v3605_v40, %s3415_s24 }
  0x90   : > { %515 = vrot.lane.b32.xlu0 %v3608_v41, %s3415_s24 }
  0x91   : > { %517 = vrot.lane.b32.xlu1 %v3617_v44, %s3415_s24 }
  0x94   : > { %519 = vrot.lane.b32.xlu0 %v3620_v45, %s3415_s24 }
  0x95   : > { %521 = vrot.lane.b32.xlu1 %v3628_v47, %s3415_s24 }
  0x98   : > { %523 = vrot.lane.b32.xlu0 %v3631_v48, %s3415_s24 }
  0x99   : > { %525 = vrot.lane.b32.xlu1 %v3641_v53, %s3415_s24 }
  0x9c   : > { %527 = vrot.lane.b32.xlu0 %v3644_v54, %s3415_s24 }
  0x9d   : > { %529 = vrot.lane.b32.xlu1 %v3653_v58, %s3415_s24 }
  0xa0   : > { %531 = vrot.lane.b32.xlu0 %v3656_v59, %s3415_s24 }
  0xa1   : > { %533 = vrot.lane.b32.xlu1 %v3665_v62, %s3415_s24 }
  0xa4   : > { %535 = vrot.lane.b32.xlu0 %v3668_v63, %s3415_s24 }
  0xa5   : > { %537 = vrot.lane.b32.xlu1 %v3676_v1, %s3415_s24 }
  0xa8   : > { %539 = vrot.lane.b32.xlu0 %v3679_v3, %s3415_s24 }
  0xa9   : > { %541 = vrot.lane.b32.xlu1 %v3687_v7, %s3415_s24 }
  0xaa   : > { %v3777_v17 = vpop.permute.xlu0 %395 }
  0xab   : > { %v3783_v18 = vpop.permute.xlu1 %399 }
  0xac   : > { %543 = vrot.lane.b32.xlu0 %v3690_v8, %s3415_s24 }
  0xad   : > { %545 = vrot.lane.b32.xlu1 %v3699_v10, %s3415_s24 }
  0xae   : > { %v3785_v20 = vpop.permute.xlu0 %403 }
  0xaf   : > { %v3791_v22 = vpop.permute.xlu1 %405 }
  0xb0   : > { %547 = vrot.lane.b32.xlu0 %v3702_v11, %s3415_s24 }
  0xb1   : > { %549 = vrot.lane.b32.xlu1 %v3710_v14, %s3415_s24 }
  0xb2   : > { %v3793_v27 = vpop.permute.xlu0 %411 }
  0xb3   : > { %v3799_v31 = vpop.permute.xlu1 %413 }
  0xb4   : > { %551 = vrot.lane.b32.xlu0 %v3713_v15, %s3415_s24 }
  0xb5   : > { %553 = vrot.lane.b32.xlu1 %v3721_v16, %s3415_s24 }
  0xb6   : > { %v3801_v32 = vpop.permute.xlu0 %397 }
  0xb7   : > { %v3807_v33 = vpop.permute.xlu1 %401 }
  0xb8   : > { %587 = vrot.lane.b32.xlu0 %v3543_v19, %s3416_s25 }
  0xb9   : > { %589 = vrot.lane.b32.xlu1 %v3574_v28, %s3416_s25 }
  0xba   : > { %v3809_v34 = vpop.permute.xlu0 %407 }
  0xbb   : > { %v3815_v37 = vpop.permute.xlu1 %409 }
  0xbc   : > { %591 = vrot.lane.b32.xlu0 %v3551_v23, %s3416_s25 }
  0xbd   : > { %593 = vrot.lane.b32.xlu1 %v3580_v29, %s3416_s25 }
  0xbe   : > { %v3817_v38 = vpop.permute.xlu0 %415 }
  0xbf   : > { %v3823_v39 = vpop.permute.xlu1 %417 }
  0xc0   : > { %595 = vrot.lane.b32.xlu0 %v3546_v21, %s3416_s25 }
  0xc1   : > { %597 = vrot.lane.b32.xlu1 %v3557_v24, %s3416_s25 }
  0xc2   : > { %v3825_v42 = vpop.permute.xlu0 %419 }
  0xc3   : > { %v3831_v43 = vpop.permute.xlu1 %421 }
  0xc4   : > { %599 = vrot.lane.b32.xlu0 %v3583_v30, %s3416_s25 }
  0xc5   : > { %601 = vrot.lane.b32.xlu1 %v3593_v35, %s3416_s25 }
  0xc6   : > { %v3833_v46 = vpop.permute.xlu0 %423 }
  0xc7   : > { %v3839_v49 = vpop.permute.xlu1 %425 }
  0xc8   : > { %603 = vrot.lane.b32.xlu0 %v3560_v25, %s3416_s25 }
  0xc9   : > { %605 = vrot.lane.b32.xlu1 %v3568_v26, %s3416_s25 }
  0xca   : > { %v3841_v50 = vpop.permute.xlu0 %427 }
  0xcb   : > { %v3847_v51 = vpop.permute.xlu1 %429 }
  0xcc   : > { %607 = vrot.lane.b32.xlu0 %v3596_v36, %s3416_s25 }
  0xcd   : > { %609 = vrot.lane.b32.xlu1 %v3605_v40, %s3416_s25 }
  0xce   : > { %v3849_v52 = vpop.permute.xlu0 %431 }
  0xcf   : > { %v3855_v55 = vpop.permute.xlu1 %433 }
  0xd0   : > { %611 = vrot.lane.b32.xlu0 %v3608_v41, %s3416_s25 }
  0xd1   : > { %613 = vrot.lane.b32.xlu1 %v3617_v44, %s3416_s25 }
  0xd2   : > { %v3857_v56 = vpop.permute.xlu0 %435 }
  0xd3   : > { %v3863_v57 = vpop.permute.xlu1 %437 }
  0xd4   : > { %615 = vrot.lane.b32.xlu0 %v3620_v45, %s3416_s25 }
  0xd5   : > { %617 = vrot.lane.b32.xlu1 %v3628_v47, %s3416_s25 }
  0xd6   : > { %v3865_v60 = vpop.permute.xlu0 %439 }
  0xd7   : > { %v3871_v61 = vpop.permute.xlu1 %441 }
  0xd8   : > { %619 = vrot.lane.b32.xlu0 %v3631_v48, %s3416_s25 }
  0xd9   : > { %621 = vrot.lane.b32.xlu1 %v3641_v53, %s3416_s25 }
  0xda   : > { %v3873_v0 = vpop.permute.xlu0 %443 }
  0xdb   : > { %v3879_v5 = vpop.permute.xlu1 %445 }
  0xdc   : > { %623 = vrot.lane.b32.xlu0 %v3644_v54, %s3416_s25  ;;  %5306 = vst [vmem:[#allocation15_spill] sm:$0xff] %v3879_v5 }
  0xdd   : > { %625 = vrot.lane.b32.xlu1 %v3653_v58, %s3416_s25 }
  0xde   : > { %v3881_v6 = vpop.permute.xlu0 %447 }
  0xdf   : > { %5307 = vst [vmem:[#allocation16_spill] sm:$0xff] %v3881_v6  ;;  %v3887_v9 = vpop.permute.xlu1 %449 }
  0xe0   : > { %627 = vrot.lane.b32.xlu0 %v3656_v59, %s3416_s25  ;;  %5308 = vst [vmem:[#allocation17_spill] sm:$0xff] %v3887_v9 }
  0xe1   : > { %629 = vrot.lane.b32.xlu1 %v3665_v62, %s3416_s25 }
  0xe2   : > { %v3889_v13 = vpop.permute.xlu0 %451 }
  0xe3   : > { %5309 = vst [vmem:[#allocation18_spill] sm:$0xff] %v3889_v13  ;;  %v3895_v2 = vpop.permute.xlu1 %453 }
  0xe4   : > { %631 = vrot.lane.b32.xlu0 %v3668_v63, %s3416_s25  ;;  %5310 = vst [vmem:[#allocation19_spill] sm:$0xff] %v3895_v2 }
  0xe5   : > { %633 = vrot.lane.b32.xlu1 %v3676_v1, %s3416_s25 }
  0xe6   : > { %v3897_v12 = vpop.permute.xlu0 %455 }
  0xe7   : > { %5311 = vst [vmem:[#allocation20_spill] sm:$0xff] %v3897_v12  ;;  %v3903_v6 = vpop.permute.xlu1 %457 }
  0xe8   : > { %635 = vrot.lane.b32.xlu0 %v3679_v3, %s3416_s25  ;;  %5312 = vst [vmem:[#allocation21_spill] sm:$0xff] %v3903_v6 }
  0xe9   : > { %637 = vrot.lane.b32.xlu1 %v3687_v7, %s3416_s25 }
  0xea   : > { %v3905_v9 = vpop.permute.xlu0 %491 }
  0xeb   : > { %5313 = vst [vmem:[#allocation22_spill] sm:$0xff] %v3905_v9  ;;  %v3911_v13 = vpop.permute.xlu1 %493 }
  0xec   : > { %639 = vrot.lane.b32.xlu0 %v3690_v8, %s3416_s25  ;;  %5314 = vst [vmem:[#allocation23_spill] sm:$0xff] %v3911_v13 }
  0xed   : > { %641 = vrot.lane.b32.xlu1 %v3699_v10, %s3416_s25 }
  0xee   : > { %v3913_v2 = vpop.permute.xlu0 %495 }
  0xef   : > { %5315 = vst [vmem:[#allocation24_spill] sm:$0xff] %v3913_v2  ;;  %v3919_v12 = vpop.permute.xlu1 %497 }
  0xf0   : > { %643 = vrot.lane.b32.xlu0 %v3702_v11, %s3416_s25  ;;  %5316 = vst [vmem:[#allocation25_spill] sm:$0xff] %v3919_v12 }
  0xf1   : > { %645 = vrot.lane.b32.xlu1 %v3710_v14, %s3416_s25 }
  0xf2   : > { %v3921_v6 = vpop.permute.xlu0 %499 }
  0xf3   : > { %5317 = vst [vmem:[#allocation26_spill] sm:$0xff] %v3921_v6  ;;  %v3927_v5 = vpop.permute.xlu1 %501 }
  0xf4   : > { %647 = vrot.lane.b32.xlu0 %v3713_v15, %s3416_s25  ;;  %5318 = vst [vmem:[#allocation27_spill] sm:$0xff] %v3927_v5 }
  0xf5   : > { %649 = vrot.lane.b32.xlu1 %v3721_v16, %s3416_s25 }
  0xf6   : > { %v3929_v13 = vpop.permute.xlu0 %503 }
  0xf7   : > { %5319 = vst [vmem:[#allocation28_spill] sm:$0xff] %v3929_v13  ;;  %v3935_v12 = vpop.permute.xlu1 %505 }
  0xf8   : > { %683 = vrot.lane.b32.xlu0 %v3543_v19, %s3417_s26  ;;  %5320 = vst [vmem:[#allocation29_spill] sm:$0xff] %v3935_v12 }
  0xf9   : > { %685 = vrot.lane.b32.xlu1 %v3574_v28, %s3417_s26 }
  0xfa   : > { %v3937_v6 = vpop.permute.xlu0 %507 }
  0xfb   : > { %5321 = vst [vmem:[#allocation30_spill] sm:$0xff] %v3937_v6  ;;  %v3943_v5 = vpop.permute.xlu1 %509 }
  0xfc   : > { %687 = vrot.lane.b32.xlu0 %v3551_v23, %s3417_s26  ;;  %5322 = vst [vmem:[#allocation31_spill] sm:$0xff] %v3943_v5 }
  0xfd   : > { %689 = vrot.lane.b32.xlu1 %v3580_v29, %s3417_s26 }
  0xfe   : > { %v3945_v13 = vpop.permute.xlu0 %511 }
  0xff   : > { %5323 = vst [vmem:[#allocation32_spill] sm:$0xff] %v3945_v13  ;;  %v3951_v2 = vpop.permute.xlu1 %513 }
 0x100   : > { %691 = vrot.lane.b32.xlu0 %v3546_v21, %s3417_s26  ;;  %5324 = vst [vmem:[#allocation33_spill] sm:$0xff] %v3951_v2 }
 0x101   : > { %693 = vrot.lane.b32.xlu1 %v3557_v24, %s3417_s26 }
 0x102   : > { %v3953_v12 = vpop.permute.xlu0 %515 }
 0x103   : > { %5325 = vst [vmem:[#allocation34_spill] sm:$0xff] %v3953_v12  ;;  %v3959_v6 = vpop.permute.xlu1 %517 }
 0x104   : > { %695 = vrot.lane.b32.xlu0 %v3583_v30, %s3417_s26  ;;  %5326 = vst [vmem:[#allocation35_spill] sm:$0xff] %v3959_v6 }
 0x105   : > { %697 = vrot.lane.b32.xlu1 %v3593_v35, %s3417_s26 }
 0x106   : > { %v3961_v5 = vpop.permute.xlu0 %519 }
 0x107   : > { %5327 = vst [vmem:[#allocation36_spill] sm:$0xff] %v3961_v5  ;;  %v3967_v13 = vpop.permute.xlu1 %521 }
 0x108   : > { %699 = vrot.lane.b32.xlu0 %v3560_v25, %s3417_s26  ;;  %5328 = vst [vmem:[#allocation37_spill] sm:$0xff] %v3967_v13 }
 0x109   : > { %701 = vrot.lane.b32.xlu1 %v3568_v26, %s3417_s26 }
 0x10a   : > { %v3969_v2 = vpop.permute.xlu0 %523 }
 0x10b   : > { %5329 = vst [vmem:[#allocation38_spill] sm:$0xff] %v3969_v2  ;;  %v3975_v12 = vpop.permute.xlu1 %525 }
 0x10c   : > { %703 = vrot.lane.b32.xlu0 %v3596_v36, %s3417_s26  ;;  %5330 = vst [vmem:[#allocation39_spill] sm:$0xff] %v3975_v12 }
 0x10d   : > { %705 = vrot.lane.b32.xlu1 %v3605_v40, %s3417_s26 }
 0x10e   : > { %v3977_v6 = vpop.permute.xlu0 %527 }
 0x10f   : > { %5331 = vst [vmem:[#allocation40_spill] sm:$0xff] %v3977_v6  ;;  %v3983_v5 = vpop.permute.xlu1 %529 }
 0x110   : > { %707 = vrot.lane.b32.xlu0 %v3608_v41, %s3417_s26  ;;  %5332 = vst [vmem:[#allocation41_spill] sm:$0xff] %v3983_v5 }
 0x111   : > { %709 = vrot.lane.b32.xlu1 %v3617_v44, %s3417_s26 }
 0x112   : > { %v3985_v13 = vpop.permute.xlu0 %531 }
 0x113   : > { %5333 = vst [vmem:[#allocation42_spill] sm:$0xff] %v3985_v13  ;;  %v3991_v2 = vpop.permute.xlu1 %533 }
 0x114   : > { %711 = vrot.lane.b32.xlu0 %v3620_v45, %s3417_s26  ;;  %5334 = vst [vmem:[#allocation43_spill] sm:$0xff] %v3991_v2 }
 0x115   : > { %713 = vrot.lane.b32.xlu1 %v3628_v47, %s3417_s26 }
 0x116   : > { %v3993_v12 = vpop.permute.xlu0 %535 }
 0x117   : > { %5335 = vst [vmem:[#allocation44_spill] sm:$0xff] %v3993_v12  ;;  %v3999_v6 = vpop.permute.xlu1 %537 }
 0x118   : > { %715 = vrot.lane.b32.xlu0 %v3631_v48, %s3417_s26  ;;  %5336 = vst [vmem:[#allocation45_spill] sm:$0xff] %v3999_v6 }
 0x119   : > { %717 = vrot.lane.b32.xlu1 %v3641_v53, %s3417_s26 }
 0x11a   : > { %v4001_v5 = vpop.permute.xlu0 %539 }
 0x11b   : > { %5337 = vst [vmem:[#allocation46_spill] sm:$0xff] %v4001_v5  ;;  %v4007_v13 = vpop.permute.xlu1 %541 }
 0x11c   : > { %719 = vrot.lane.b32.xlu0 %v3644_v54, %s3417_s26  ;;  %5338 = vst [vmem:[#allocation47_spill] sm:$0xff] %v4007_v13 }
 0x11d   : > { %721 = vrot.lane.b32.xlu1 %v3653_v58, %s3417_s26 }
 0x11e   : > { %v4009_v2 = vpop.permute.xlu0 %543 }
 0x11f   : > { %5339 = vst [vmem:[#allocation48_spill] sm:$0xff] %v4009_v2  ;;  %v4015_v12 = vpop.permute.xlu1 %545 }
 0x120   : > { %723 = vrot.lane.b32.xlu0 %v3656_v59, %s3417_s26  ;;  %5340 = vst [vmem:[#allocation49_spill] sm:$0xff] %v4015_v12 }
 0x121   : > { %725 = vrot.lane.b32.xlu1 %v3665_v62, %s3417_s26 }
 0x122   : > { %v4017_v6 = vpop.permute.xlu0 %547 }
 0x123   : > { %5341 = vst [vmem:[#allocation50_spill] sm:$0xff] %v4017_v6  ;;  %v4023_v5 = vpop.permute.xlu1 %549 }
 0x124   : > { %727 = vrot.lane.b32.xlu0 %v3668_v63, %s3417_s26  ;;  %5342 = vst [vmem:[#allocation51_spill] sm:$0xff] %v4023_v5 }
 0x125   : > { %729 = vrot.lane.b32.xlu1 %v3676_v1, %s3417_s26 }
 0x126   : > { %v4025_v13 = vpop.permute.xlu0 %551 }
 0x127   : > { %5343 = vst [vmem:[#allocation52_spill] sm:$0xff] %v4025_v13  ;;  %v4031_v2 = vpop.permute.xlu1 %553 }
 0x128   : > { %731 = vrot.lane.b32.xlu0 %v3679_v3, %s3417_s26  ;;  %5344 = vst [vmem:[#allocation53_spill] sm:$0xff] %v4031_v2 }
 0x129   : > { %733 = vrot.lane.b32.xlu1 %v3687_v7, %s3417_s26 }
 0x12a   : > { %v4033_v12 = vpop.permute.xlu0 %587 }
 0x12b   : > { %v4039_v6 = vpop.permute.xlu1 %589 }
 0x12c   : > { %735 = vrot.lane.b32.xlu0 %v3690_v8, %s3417_s26  ;;  %5345 = vst [vmem:[#allocation54_spill] sm:$0xff] %v4039_v6 }
 0x12d   : > { %737 = vrot.lane.b32.xlu1 %v3699_v10, %s3417_s26 }
 0x12e   : > { %v4041_v5 = vpop.permute.xlu0 %591 }
 0x12f   : > { %5346 = vst [vmem:[#allocation55_spill] sm:$0xff] %v4041_v5  ;;  %v4047_v13 = vpop.permute.xlu1 %593 }
 0x130   : > { %739 = vrot.lane.b32.xlu0 %v3702_v11, %s3417_s26  ;;  %5347 = vst [vmem:[#allocation56_spill] sm:$0xff] %v4047_v13 }
 0x131   : > { %741 = vrot.lane.b32.xlu1 %v3710_v14, %s3417_s26 }
 0x132   : > { %v4049_v2 = vpop.permute.xlu0 %595 }
 0x133   : > { %5348 = vst [vmem:[#allocation57_spill] sm:$0xff] %v4049_v2  ;;  %v4055_v9 = vpop.permute.xlu1 %597 }
 0x134   : > { %743 = vrot.lane.b32.xlu0 %v3713_v15, %s3417_s26  ;;  %5349 = vst [vmem:[#allocation58_spill] sm:$0xff] %v4055_v9 }
 0x135   : > { %745 = vrot.lane.b32.xlu1 %v3721_v16, %s3417_s26 }
 0x136   : > { %v4057_v6 = vpop.permute.xlu0 %599 }
 0x137   : > { %5350 = vst [vmem:[#allocation59_spill] sm:$0xff] %v4057_v6  ;;  %v4063_v13 = vpop.permute.xlu1 %601 }
 0x138   : > { %779 = vrot.lane.b32.xlu0 %v3543_v19, %s3418_s27  ;;  %5351 = vst [vmem:[#allocation60_spill] sm:$0xff] %v4063_v13 }
 0x139   : > { %781 = vrot.lane.b32.xlu1 %v3574_v28, %s3418_s27 }
 0x13a   : > { %v4065_v2 = vpop.permute.xlu0 %603 }
 0x13b   : > { %5352 = vst [vmem:[#allocation61_spill] sm:$0xff] %v4065_v2  ;;  %v4071_v9 = vpop.permute.xlu1 %605 }
 0x13c   : > { %783 = vrot.lane.b32.xlu0 %v3551_v23, %s3418_s27  ;;  %5353 = vst [vmem:[#allocation62_spill] sm:$0xff] %v4071_v9 }
 0x13d   : > { %785 = vrot.lane.b32.xlu1 %v3580_v29, %s3418_s27 }
 0x13e   : > { %v4073_v6 = vpop.permute.xlu0 %607 }
 0x13f   : > { %5354 = vst [vmem:[#allocation63_spill] sm:$0xff] %v4073_v6  ;;  %v4079_v5 = vpop.permute.xlu1 %609 }
 0x140   : > { %787 = vrot.lane.b32.xlu0 %v3546_v21, %s3418_s27  ;;  %5355 = vst [vmem:[#allocation64_spill] sm:$0xff] %v4079_v5 }
 0x141   : > { %789 = vrot.lane.b32.xlu1 %v3557_v24, %s3418_s27 }
 0x142   : > { %v4081_v13 = vpop.permute.xlu0 %611 }
 0x143   : > { %5356 = vst [vmem:[#allocation65_spill] sm:$0xff] %v4081_v13  ;;  %v4087_v2 = vpop.permute.xlu1 %613 }
 0x144   : > { %791 = vrot.lane.b32.xlu0 %v3583_v30, %s3418_s27  ;;  %5357 = vst [vmem:[#allocation66_spill] sm:$0xff] %v4087_v2 }
 0x145   : > { %793 = vrot.lane.b32.xlu1 %v3593_v35, %s3418_s27 }
 0x146   : > { %v4089_v9 = vpop.permute.xlu0 %615 }
 0x147   : > { %5358 = vst [vmem:[#allocation67_spill] sm:$0xff] %v4089_v9  ;;  %v4095_v6 = vpop.permute.xlu1 %617 }
 0x148   : > { %795 = vrot.lane.b32.xlu0 %v3560_v25, %s3418_s27  ;;  %5359 = vst [vmem:[#allocation68_spill] sm:$0xff] %v4095_v6 }
 0x149   : > { %797 = vrot.lane.b32.xlu1 %v3568_v26, %s3418_s27 }
 0x14a   : > { %v4097_v5 = vpop.permute.xlu0 %619 }
 0x14b   : > { %5360 = vst [vmem:[#allocation69_spill] sm:$0xff] %v4097_v5  ;;  %v4103_v13 = vpop.permute.xlu1 %621 }
 0x14c   : > { %799 = vrot.lane.b32.xlu0 %v3596_v36, %s3418_s27  ;;  %5361 = vst [vmem:[#allocation70_spill] sm:$0xff] %v4103_v13 }
 0x14d   : > { %801 = vrot.lane.b32.xlu1 %v3605_v40, %s3418_s27 }
 0x14e   : > { %v4105_v2 = vpop.permute.xlu0 %623 }
 0x14f   : > { %5362 = vst [vmem:[#allocation71_spill] sm:$0xff] %v4105_v2  ;;  %v4111_v9 = vpop.permute.xlu1 %625 }
 0x150   : > { %803 = vrot.lane.b32.xlu0 %v3608_v41, %s3418_s27  ;;  %5363 = vst [vmem:[#allocation72_spill] sm:$0xff] %v4111_v9 }
 0x151   : > { %805 = vrot.lane.b32.xlu1 %v3617_v44, %s3418_s27 }
 0x152   : > { %v4113_v6 = vpop.permute.xlu0 %627 }
 0x153   : > { %5364 = vst [vmem:[#allocation73_spill] sm:$0xff] %v4113_v6  ;;  %v4119_v5 = vpop.permute.xlu1 %629 }
 0x154   : > { %807 = vrot.lane.b32.xlu0 %v3620_v45, %s3418_s27  ;;  %5365 = vst [vmem:[#allocation74_spill] sm:$0xff] %v4119_v5 }
 0x155   : > { %809 = vrot.lane.b32.xlu1 %v3628_v47, %s3418_s27 }
 0x156   : > { %v4121_v13 = vpop.permute.xlu0 %631 }
 0x157   : > { %5366 = vst [vmem:[#allocation75_spill] sm:$0xff] %v4121_v13  ;;  %v4127_v2 = vpop.permute.xlu1 %633 }
 0x158   : > { %811 = vrot.lane.b32.xlu0 %v3631_v48, %s3418_s27  ;;  %5367 = vst [vmem:[#allocation76_spill] sm:$0xff] %v4127_v2 }
 0x159   : > { %813 = vrot.lane.b32.xlu1 %v3641_v53, %s3418_s27 }
 0x15a   : > { %v4129_v9 = vpop.permute.xlu0 %635 }
 0x15b   : > { %5368 = vst [vmem:[#allocation77_spill] sm:$0xff] %v4129_v9  ;;  %v4135_v6 = vpop.permute.xlu1 %637 }
 0x15c   : > { %815 = vrot.lane.b32.xlu0 %v3644_v54, %s3418_s27  ;;  %5369 = vst [vmem:[#allocation78_spill] sm:$0xff] %v4135_v6 }
 0x15d   : > { %817 = vrot.lane.b32.xlu1 %v3653_v58, %s3418_s27 }
 0x15e   : > { %v4137_v5 = vpop.permute.xlu0 %639 }
 0x15f   : > { %5370 = vst [vmem:[#allocation79_spill] sm:$0xff] %v4137_v5  ;;  %v4143_v13 = vpop.permute.xlu1 %641 }
 0x160   : > { %819 = vrot.lane.b32.xlu0 %v3656_v59, %s3418_s27  ;;  %5371 = vst [vmem:[#allocation80_spill] sm:$0xff] %v4143_v13 }
 0x161   : > { %821 = vrot.lane.b32.xlu1 %v3665_v62, %s3418_s27 }
 0x162   : > { %v4145_v2 = vpop.permute.xlu0 %643 }
 0x163   : > { %5372 = vst [vmem:[#allocation81_spill] sm:$0xff] %v4145_v2  ;;  %v4151_v9 = vpop.permute.xlu1 %645 }
 0x164   : > { %823 = vrot.lane.b32.xlu0 %v3668_v63, %s3418_s27  ;;  %5373 = vst [vmem:[#allocation82_spill] sm:$0xff] %v4151_v9 }
 0x165   : > { %825 = vrot.lane.b32.xlu1 %v3676_v1, %s3418_s27 }
 0x166   : > { %v4153_v6 = vpop.permute.xlu0 %647 }
 0x167   : > { %5374 = vst [vmem:[#allocation83_spill] sm:$0xff] %v4153_v6  ;;  %v4159_v5 = vpop.permute.xlu1 %649 }
 0x168   : > { %827 = vrot.lane.b32.xlu0 %v3679_v3, %s3418_s27  ;;  %5375 = vst [vmem:[#allocation84_spill] sm:$0xff] %v4159_v5 }
 0x169   : > { %829 = vrot.lane.b32.xlu1 %v3687_v7, %s3418_s27 }
 0x16a   : > { %v4161_v13 = vpop.permute.xlu0 %683 }
 0x16b   : > { %5376 = vst [vmem:[#allocation85_spill] sm:$0xff] %v4161_v13  ;;  %v4167_v2 = vpop.permute.xlu1 %685 }
 0x16c   : > { %831 = vrot.lane.b32.xlu0 %v3690_v8, %s3418_s27  ;;  %5377 = vst [vmem:[#allocation86_spill] sm:$0xff] %v4167_v2 }
 0x16d   : > { %833 = vrot.lane.b32.xlu1 %v3699_v10, %s3418_s27 }
 0x16e   : > { %v4169_v9 = vpop.permute.xlu0 %687 }
 0x16f   : > { %5378 = vst [vmem:[#allocation87_spill] sm:$0xff] %v4169_v9  ;;  %v4175_v6 = vpop.permute.xlu1 %689 }
 0x170   : > { %835 = vrot.lane.b32.xlu0 %v3702_v11, %s3418_s27  ;;  %5379 = vst [vmem:[#allocation88_spill] sm:$0xff] %v4175_v6 }
 0x171   : > { %837 = vrot.lane.b32.xlu1 %v3710_v14, %s3418_s27 }
 0x172   : > { %v4177_v5 = vpop.permute.xlu0 %691 }
 0x173   : > { %5380 = vst [vmem:[#allocation89_spill] sm:$0xff] %v4177_v5  ;;  %v4183_v13 = vpop.permute.xlu1 %693 }
 0x174   : > { %839 = vrot.lane.b32.xlu0 %v3713_v15, %s3418_s27  ;;  %5381 = vst [vmem:[#allocation90_spill] sm:$0xff] %v4183_v13 }
 0x175   : > { %841 = vrot.lane.b32.xlu1 %v3721_v16, %s3418_s27 }
 0x176   : > { %v4185_v2 = vpop.permute.xlu0 %695 }
 0x177   : > { %5382 = vst [vmem:[#allocation91_spill] sm:$0xff] %v4185_v2  ;;  %v4191_v6 = vpop.permute.xlu1 %697 }
 0x178   : > { %875 = vrot.lane.b32.xlu0 %v3543_v19, %s3419_s28  ;;  %5383 = vst [vmem:[#allocation92_spill] sm:$0xff] %v4191_v6 }
 0x179   : > { %877 = vrot.lane.b32.xlu1 %v3574_v28, %s3419_s28 }
 0x17a   : > { %v4193_v5 = vpop.permute.xlu0 %699 }
 0x17b   : > { %5384 = vst [vmem:[#allocation93_spill] sm:$0xff] %v4193_v5  ;;  %v4199_v13 = vpop.permute.xlu1 %701 }
 0x17c   : > { %879 = vrot.lane.b32.xlu0 %v3551_v23, %s3419_s28  ;;  %5385 = vst [vmem:[#allocation94_spill] sm:$0xff] %v4199_v13 }
 0x17d   : > { %881 = vrot.lane.b32.xlu1 %v3580_v29, %s3419_s28 }
 0x17e   : > { %v4201_v2 = vpop.permute.xlu0 %703 }
 0x17f   : > { %5386 = vst [vmem:[#allocation95_spill] sm:$0xff] %v4201_v2  ;;  %v4207_v9 = vpop.permute.xlu1 %705 }
 0x180   : > { %883 = vrot.lane.b32.xlu0 %v3546_v21, %s3419_s28  ;;  %5387 = vst [vmem:[#allocation96_spill] sm:$0xff] %v4207_v9 }
 0x181   : > { %885 = vrot.lane.b32.xlu1 %v3557_v24, %s3419_s28 }
 0x182   : > { %v4209_v6 = vpop.permute.xlu0 %707 }
 0x183   : > { %5388 = vst [vmem:[#allocation97_spill] sm:$0xff] %v4209_v6  ;;  %v4215_v5 = vpop.permute.xlu1 %709 }
 0x184   : > { %887 = vrot.lane.b32.xlu0 %v3583_v30, %s3419_s28  ;;  %5389 = vst [vmem:[#allocation98_spill] sm:$0xff] %v4215_v5 }
 0x185   : > { %889 = vrot.lane.b32.xlu1 %v3593_v35, %s3419_s28 }
 0x186   : > { %v4217_v13 = vpop.permute.xlu0 %711 }
 0x187   : > { %5390 = vst [vmem:[#allocation99_spill] sm:$0xff] %v4217_v13  ;;  %v4223_v2 = vpop.permute.xlu1 %713 }
 0x188   : > { %891 = vrot.lane.b32.xlu0 %v3560_v25, %s3419_s28  ;;  %5391 = vst [vmem:[#allocation100_spill] sm:$0xff] %v4223_v2 }
 0x189   : > { %893 = vrot.lane.b32.xlu1 %v3568_v26, %s3419_s28 }
 0x18a   : > { %v4225_v9 = vpop.permute.xlu0 %715 }
 0x18b   : > { %5392 = vst [vmem:[#allocation101_spill] sm:$0xff] %v4225_v9  ;;  %v4231_v6 = vpop.permute.xlu1 %717 }
 0x18c   : > { %895 = vrot.lane.b32.xlu0 %v3596_v36, %s3419_s28  ;;  %5393 = vst [vmem:[#allocation102_spill] sm:$0xff] %v4231_v6 }
 0x18d   : > { %897 = vrot.lane.b32.xlu1 %v3605_v40, %s3419_s28 }
 0x18e   : > { %v4233_v5 = vpop.permute.xlu0 %719 }
 0x18f   : > { %5394 = vst [vmem:[#allocation103_spill] sm:$0xff] %v4233_v5  ;;  %v4239_v13 = vpop.permute.xlu1 %721 }
 0x190   : > { %899 = vrot.lane.b32.xlu0 %v3608_v41, %s3419_s28  ;;  %5395 = vst [vmem:[#allocation104_spill] sm:$0xff] %v4239_v13 }
 0x191   : > { %901 = vrot.lane.b32.xlu1 %v3617_v44, %s3419_s28 }
 0x192   : > { %v4241_v2 = vpop.permute.xlu0 %723 }
 0x193   : > { %5396 = vst [vmem:[#allocation105_spill] sm:$0xff] %v4241_v2  ;;  %v4247_v9 = vpop.permute.xlu1 %725 }
 0x194   : > { %903 = vrot.lane.b32.xlu0 %v3620_v45, %s3419_s28  ;;  %5397 = vst [vmem:[#allocation106_spill] sm:$0xff] %v4247_v9 }
 0x195   : > { %905 = vrot.lane.b32.xlu1 %v3628_v47, %s3419_s28 }
 0x196   : > { %v4249_v6 = vpop.permute.xlu0 %727 }
 0x197   : > { %5398 = vst [vmem:[#allocation107_spill] sm:$0xff] %v4249_v6  ;;  %v4255_v5 = vpop.permute.xlu1 %729 }
 0x198   : > { %907 = vrot.lane.b32.xlu0 %v3631_v48, %s3419_s28  ;;  %5399 = vst [vmem:[#allocation108_spill] sm:$0xff] %v4255_v5 }
 0x199   : > { %909 = vrot.lane.b32.xlu1 %v3641_v53, %s3419_s28 }
 0x19a   : > { %v4257_v13 = vpop.permute.xlu0 %731 }
 0x19b   : > { %5400 = vst [vmem:[#allocation109_spill] sm:$0xff] %v4257_v13  ;;  %v4263_v2 = vpop.permute.xlu1 %733 }
 0x19c   : > { %911 = vrot.lane.b32.xlu0 %v3644_v54, %s3419_s28  ;;  %5401 = vst [vmem:[#allocation110_spill] sm:$0xff] %v4263_v2 }
 0x19d   : > { %913 = vrot.lane.b32.xlu1 %v3653_v58, %s3419_s28 }
 0x19e   : > { %v4265_v9 = vpop.permute.xlu0 %735 }
 0x19f   : > { %5402 = vst [vmem:[#allocation111_spill] sm:$0xff] %v4265_v9  ;;  %v4271_v6 = vpop.permute.xlu1 %737 }
 0x1a0   : > { %915 = vrot.lane.b32.xlu0 %v3656_v59, %s3419_s28  ;;  %5403 = vst [vmem:[#allocation112_spill] sm:$0xff] %v4271_v6 }
 0x1a1   : > { %917 = vrot.lane.b32.xlu1 %v3665_v62, %s3419_s28 }
 0x1a2   : > { %v4273_v5 = vpop.permute.xlu0 %739 }
 0x1a3   : > { %5404 = vst [vmem:[#allocation113_spill] sm:$0xff] %v4273_v5  ;;  %v4279_v13 = vpop.permute.xlu1 %741 }
 0x1a4   : > { %919 = vrot.lane.b32.xlu0 %v3668_v63, %s3419_s28  ;;  %5405 = vst [vmem:[#allocation114_spill] sm:$0xff] %v4279_v13 }
 0x1a5   : > { %921 = vrot.lane.b32.xlu1 %v3676_v1, %s3419_s28 }
 0x1a6   : > { %v4281_v2 = vpop.permute.xlu0 %743 }
 0x1a7   : > { %5406 = vst [vmem:[#allocation115_spill] sm:$0xff] %v4281_v2  ;;  %v4287_v9 = vpop.permute.xlu1 %745 }
 0x1a8   : > { %923 = vrot.lane.b32.xlu0 %v3679_v3, %s3419_s28  ;;  %5407 = vst [vmem:[#allocation116_spill] sm:$0xff] %v4287_v9 }
 0x1a9   : > { %925 = vrot.lane.b32.xlu1 %v3687_v7, %s3419_s28 }
 0x1aa   : > { %v4289_v6 = vpop.permute.xlu0 %779 }
 0x1ab   : > { %5408 = vst [vmem:[#allocation117_spill] sm:$0xff] %v4289_v6  ;;  %v4295_v5 = vpop.permute.xlu1 %781 }
 0x1ac   : > { %927 = vrot.lane.b32.xlu0 %v3690_v8, %s3419_s28  ;;  %5409 = vst [vmem:[#allocation118_spill] sm:$0xff] %v4295_v5 }
 0x1ad   : > { %929 = vrot.lane.b32.xlu1 %v3699_v10, %s3419_s28 }
 0x1ae   : > { %v4297_v13 = vpop.permute.xlu0 %783 }
 0x1af   : > { %5410 = vst [vmem:[#allocation119_spill] sm:$0xff] %v4297_v13  ;;  %v4303_v2 = vpop.permute.xlu1 %785 }
 0x1b0   : > { %931 = vrot.lane.b32.xlu0 %v3702_v11, %s3419_s28  ;;  %5411 = vst [vmem:[#allocation120_spill] sm:$0xff] %v4303_v2 }
 0x1b1   : > { %971 = vrot.lane.b32.xlu1 %v3543_v19, %s3420_s29 }
 0x1b2   : > { %v4305_v9 = vpop.permute.xlu0 %787 }
 0x1b3   : > { %5412 = vst [vmem:[#allocation121_spill] sm:$0xff] %v4305_v9  ;;  %v4311_v5 = vpop.permute.xlu1 %789 }
 0x1b4   : > { %973 = vrot.lane.b32.xlu0 %v3574_v28, %s3420_s29  ;;  %5413 = vst [vmem:[#allocation122_spill] sm:$0xff] %v4311_v5 }
 0x1b5   : > { %987 = vrot.lane.b32.xlu1 %v3560_v25, %s3420_s29 }
 0x1b6   : > { %v4313_v13 = vpop.permute.xlu0 %791 }
 0x1b7   : > { %5414 = vst [vmem:[#allocation123_spill] sm:$0xff] %v4313_v13  ;;  %v4319_v2 = vpop.permute.xlu1 %793 }
 0x1b8   : > { %989 = vrot.lane.b32.xlu0 %v3568_v26, %s3420_s29  ;;  %5415 = vst [vmem:[#allocation124_spill] sm:$0xff] %v4319_v2 }
 0x1b9   : > { %1003 = vrot.lane.b32.xlu1 %v3631_v48, %s3420_s29 }
 0x1ba   : > { %v4321_v9 = vpop.permute.xlu0 %795 }
 0x1bb   : > { %5416 = vst [vmem:[#allocation125_spill] sm:$0xff] %v4321_v9  ;;  %v4327_v6 = vpop.permute.xlu1 %797 }
 0x1bc   : > { %1005 = vrot.lane.b32.xlu0 %v3641_v53, %s3420_s29  ;;  %5417 = vst [vmem:[#allocation126_spill] sm:$0xff] %v4327_v6 }
 0x1bd   : > { %1019 = vrot.lane.b32.xlu1 %v3679_v3, %s3420_s29 }
 0x1be   : > { %v4329_v5 = vpop.permute.xlu0 %799 }
 0x1bf   : > { %5418 = vst [vmem:[#allocation127_spill] sm:$0xff] %v4329_v5  ;;  %v4335_v13 = vpop.permute.xlu1 %801 }
 0x1c0   : > { %1021 = vrot.lane.b32.xlu0 %v3687_v7, %s3420_s29  ;;  %5419 = vst [vmem:[#allocation128_spill] sm:$0xff] %v4335_v13 }
 0x1c1   : > { %975 = vrot.lane.b32.xlu1 %v3551_v23, %s3420_s29 }
 0x1c2   : > { %v4337_v2 = vpop.permute.xlu0 %803 }
 0x1c3   : > { %5420 = vst [vmem:[#allocation129_spill] sm:$0xff] %v4337_v2  ;;  %v4343_v9 = vpop.permute.xlu1 %805 }
 0x1c4   : > { %991 = vrot.lane.b32.xlu0 %v3596_v36, %s3420_s29  ;;  %5421 = vst [vmem:[#allocation130_spill] sm:$0xff] %v4343_v9 }
 0x1c5   : > { %1007 = vrot.lane.b32.xlu1 %v3644_v54, %s3420_s29 }
 0x1c6   : > { %v4345_v6 = vpop.permute.xlu0 %807 }
 0x1c7   : > { %5422 = vst [vmem:[#allocation131_spill] sm:$0xff] %v4345_v6  ;;  %v4351_v5 = vpop.permute.xlu1 %809 }
 0x1c8   : > { %1023 = vrot.lane.b32.xlu0 %v3690_v8, %s3420_s29  ;;  %5423 = vst [vmem:[#allocation132_spill] sm:$0xff] %v4351_v5 }
 0x1c9   : > { %977 = vrot.lane.b32.xlu1 %v3580_v29, %s3420_s29 }
 0x1ca   : > { %v4353_v13 = vpop.permute.xlu0 %811 }
 0x1cb   : > { %5424 = vst [vmem:[#allocation133_spill] sm:$0xff] %v4353_v13  ;;  %v4359_v2 = vpop.permute.xlu1 %813 }
 0x1cc   : > { %993 = vrot.lane.b32.xlu0 %v3605_v40, %s3420_s29  ;;  %5425 = vst [vmem:[#allocation134_spill] sm:$0xff] %v4359_v2 }
 0x1cd   : > { %1009 = vrot.lane.b32.xlu1 %v3653_v58, %s3420_s29 }
 0x1ce   : > { %v4361_v9 = vpop.permute.xlu0 %815 }
 0x1cf   : > { %5426 = vst [vmem:[#allocation135_spill] sm:$0xff] %v4361_v9  ;;  %v4367_v6 = vpop.permute.xlu1 %817 }
 0x1d0   : > { %1025 = vrot.lane.b32.xlu0 %v3699_v10, %s3420_s29  ;;  %5427 = vst [vmem:[#allocation136_spill] sm:$0xff] %v4367_v6  ;;  %v1323_v10 = vcombine.low %v3551_v23, %v3783_v18  ;;  %v1451_v23 = vcombine.low %v3580_v29, %v3807_v33  ;;  %v1355_v29 = vcombine.low %v3596_v36, %v3817_v38 }
 0x1d1   : > { %979 = vrot.lane.b32.xlu1 %v3546_v21, %s3420_s29  ;;  %v1515_v38 = vcombine.low %v3653_v58, %v3855_v55  ;;  %v1899_v58 = vcombine.low %v3668_v63, %v3865_v60 }
 0x1d2   : > { %v4369_v5 = vpop.permute.xlu0 %819 }
 0x1d3   : > { %5428 = vst [vmem:[#allocation137_spill] sm:$0xff] %v4369_v5  ;;  %v4375_v13 = vpop.permute.xlu1 %821 }
 0x1d4   : > { %995 = vrot.lane.b32.xlu0 %v3608_v41, %s3420_s29  ;;  %5429 = vst [vmem:[#allocation138_spill] sm:$0xff] %v4375_v13 }
 0x1d5   : > { %1011 = vrot.lane.b32.xlu1 %v3656_v59, %s3420_s29 }
 0x1d6   : > { %v4377_v2 = vpop.permute.xlu0 %823 }
 0x1d7   : > { %5430 = vst [vmem:[#allocation139_spill] sm:$0xff] %v4377_v2  ;;  %v4383_v9 = vpop.permute.xlu1 %825 }
 0x1d8   : > { %1027 = vrot.lane.b32.xlu0 %v3702_v11, %s3420_s29  ;;  %5431 = vst [vmem:[#allocation140_spill] sm:$0xff] %v4383_v9 }
 0x1d9   : > { %933 = vrot.lane.b32.xlu1 %v3710_v14, %s3419_s28 }
 0x1da   : > { %v4385_v6 = vpop.permute.xlu0 %827 }
 0x1db   : > { %5432 = vst [vmem:[#allocation141_spill] sm:$0xff] %v4385_v6  ;;  %v4391_v5 = vpop.permute.xlu1 %829 }
 0x1dc   : > { %981 = vrot.lane.b32.xlu0 %v3557_v24, %s3420_s29  ;;  %5433 = vst [vmem:[#allocation142_spill] sm:$0xff] %v4391_v5 }
 0x1dd   : > { %997 = vrot.lane.b32.xlu1 %v3617_v44, %s3420_s29 }
 0x1de   : > { %v4393_v13 = vpop.permute.xlu0 %831 }
 0x1df   : > { %5434 = vst [vmem:[#allocation143_spill] sm:$0xff] %v4393_v13  ;;  %v4399_v2 = vpop.permute.xlu1 %833 }
 0x1e0   : > { %1013 = vrot.lane.b32.xlu0 %v3665_v62, %s3420_s29  ;;  %5435 = vst [vmem:[#allocation144_spill] sm:$0xff] %v4399_v2 }
 0x1e1   : > { %1029 = vrot.lane.b32.xlu1 %v3710_v14, %s3420_s29 }
 0x1e2   : > { %v4401_v9 = vpop.permute.xlu0 %835 }
 0x1e3   : > { %5436 = vst [vmem:[#allocation145_spill] sm:$0xff] %v4401_v9  ;;  %v4407_v6 = vpop.permute.xlu1 %837 }
 0x1e4   : > { %935 = vrot.lane.b32.xlu0 %v3713_v15, %s3419_s28  ;;  %5437 = vst [vmem:[#allocation146_spill] sm:$0xff] %v4407_v6 }
 0x1e5   : > { %983 = vrot.lane.b32.xlu1 %v3583_v30, %s3420_s29 }
 0x1e6   : > { %v4409_v5 = vpop.permute.xlu0 %839 }
 0x1e7   : > { %5438 = vst [vmem:[#allocation147_spill] sm:$0xff] %v4409_v5  ;;  %v4415_v13 = vpop.permute.xlu1 %841 }
 0x1e8   : > { %999 = vrot.lane.b32.xlu0 %v3620_v45, %s3420_s29  ;;  %5439 = vst [vmem:[#allocation148_spill] sm:$0xff] %v4415_v13 }
 0x1e9   : > { %1015 = vrot.lane.b32.xlu1 %v3668_v63, %s3420_s29 }
 0x1ea   : > { %v4417_v2 = vpop.permute.xlu0 %875 }
 0x1eb   : > { %5440 = vst [vmem:[#allocation149_spill] sm:$0xff] %v4417_v2  ;;  %v4423_v9 = vpop.permute.xlu1 %877  ;;  %v3421_v2 = vmov 1934713408  }
 0x1ec   : > { %1031 = vrot.lane.b32.xlu0 %v3713_v15, %s3420_s29  ;;  %5441 = vst [vmem:[#allocation150_spill] sm:$0xff] %v4423_v9  ;;  %v1069_v14 = vunpack.c.l.s4 %v3421_v2  ;;  %v1067_v2 = vcombine.low %v3543_v19, %v3777_v17  ;;  %v1195_v19 = vcombine.low %v3574_v28, %v3801_v32 }
 0x1ed   : > { %937 = vrot.lane.b32.xlu1 %v3721_v16, %s3419_s28 }
 0x1ee   : > { %v4425_v6 = vpop.permute.xlu0 %879  ;;  %v1070_v15 = vunpack.c.0.s8 %v1069_v14 }
 0x1ef   : > { %5442 = vst [vmem:[#allocation151_spill] sm:$0xff] %v4425_v6  ;;  %v4431_v5 = vpop.permute.xlu1 %881 }
 0x1f0   : > { %985 = vrot.lane.b32.xlu0 %v3593_v35, %s3420_s29  ;;  %5443 = vst [vmem:[#allocation152_spill] sm:$0xff] %v4431_v5 }
 0x1f1   : > { %1001 = vrot.lane.b32.xlu1 %v3628_v47, %s3420_s29 }
 0x1f2   : > { %v4433_v13 = vpop.permute.xlu0 %883 }
 0x1f3   : > { %5444 = vst [vmem:[#allocation153_spill] sm:$0xff] %v4433_v13  ;;  %v4439_v9 = vpop.permute.xlu1 %885  ;;  %v4450_v13 = vsub.s32 %v1070_v15, %v3530_v4  ;;  %v1227_v15 = vcombine.low %v3568_v26, %v3799_v31  ;;  %v1963_v26 = vcombine.low %v3593_v35, %v3815_v37  ;;  %v1611_v35 = vcombine.low %v3608_v41, %v3825_v42 }
 0x1f4   : > { %1017 = vrot.lane.b32.xlu0 %v3676_v1, %s3420_s29  ;;  %5445 = vst [vmem:[#allocation154_spill] sm:$0xff] %v4439_v9  ;;  %v1707_v9 = vcombine.low %v3557_v24, %v3791_v22 }
 0x1f5   : > { %1033 = vrot.lane.b32.xlu1 %v3721_v16, %s3420_s29  ;;  %v4476_v24 = vrot.slane %v1323_v10, %v4450_v13  ;;  %v4505_v31 = vrot.slane %v1195_v19, %v4450_v13  ;;  %v4508_v36 = vrot.slane %v1451_v23, %v4450_v13  ;;  %v4520_v41 = vrot.slane %v1963_v26, %v4450_v13  ;;  %v5459_v19 = vld [vmem:[#allocation56_spill] sm:$0xff]  ;;  %v5460_v23 = vld [vmem:[#allocation25_spill] sm:$0xff] }
 0x1f6   : > { %v4441_v6 = vpop.permute.xlu0 %887  ;;  %v4486_v28 = vrot.slane %v1707_v9, %v4450_v13  ;;  %v4527_v37 = vrot.slane %v1355_v29, %v4450_v13  ;;  %v4539_v42 = vrot.slane %v1611_v35, %v4450_v13  ;;  %v4574_v63 = vrot.slane %v1515_v38, %v4450_v13  ;;  %v5464_v35 = vld [vmem:[#allocation26_spill] sm:$0xff] }
 0x1f7   : > { %5446 = vst [vmem:[#allocation155_spill] sm:$0xff] %v4441_v6  ;;  %v4445_v11 = vpop.permute.xlu1 %889  ;;  %v1579_v6 = vcombine.low %v3546_v21, %v3785_v20  ;;  %v4473_v21 = vrot.slane %v1067_v2, %v4450_v13  ;;  %v1483_v20 = vcombine.low %v3605_v40, %v3823_v39  ;;  %v1867_v40 = vcombine.low %v3620_v45, %v3833_v46 }
 0x1f8   : > { %5447 = vst [vmem:[#allocation156_spill] sm:$0xff] %v4445_v11  ;;  %v1099_v11 = vcombine.low %v3560_v25, %v3793_v27  ;;  %v1835_v25 = vcombine.low %v3583_v30, %v3809_v34  ;;  %v4498_v30 = vrot.slane %v1227_v15, %v4450_v13  ;;  %v1739_v27 = vcombine.low %v3617_v44, %v3831_v43 }
 0x1f9   : > { %v4483_v18 = vrot.slane %v1579_v6, %v4450_v13  ;;  %5448 = vst [vmem:[#allocation157_spill] sm:$0xff] %v4520_v41  ;;  %v1131_v44 = vcombine.low %v3631_v48, %v3841_v50  ;;  %v1259_v34 = vcombine.low %v3641_v53, %v3847_v51  ;;  %v4530_v45 = vrot.slane %v1483_v20, %v4450_v13  ;;  %v5455_v6 = vld [vmem:[#allocation24_spill] sm:$0xff]  ;;  %v5463_v20 = vld [vmem:[#allocation57_spill] sm:$0xff]  ;;  %v5516_v41 = vld [vmem:[#allocation46_spill] sm:$0xff] }
 0x1fa   : > { %v4447_v5 = vpop.permute.xlu0 %891  ;;  %v4495_v22 = vrot.slane %v1099_v11, %v4450_v13  ;;  %v1995_v11 = vcombine.low %v3628_v47, %v3839_v49  ;;  %v4517_v33 = vrot.slane %v1835_v25, %v4450_v13  ;;  %v1387_v47 = vcombine.low %v3644_v54, %v3849_v52  ;;  %v5451_v52 = vld [vmem:[#allocation22_spill] sm:$0xff] }
 0x1fb   : > { %v4460_v14 = vpop.permute.xlu1 %893  ;;  %v4542_v48 = vrot.slane %v1739_v27, %v4450_v13  ;;  %v1643_v53 = vcombine.low %v3656_v59, %v3857_v56  ;;  %v1771_v43 = vcombine.low %v3665_v62, %v3863_v57  ;;  %v4549_v46 = vrot.slane %v1867_v40, %v4450_v13  ;;  %v5453_v57 = vld [vmem:[#allocation23_spill] sm:$0xff]  ;;  %v5465_v40 = vld [vmem:[#allocation58_spill] sm:$0xff] }
 0x1fc   : > { %v4552_v54 = vrot.slane %v1995_v11, %v4450_v13  ;;  %v2027_v49 = vcombine.low %v3676_v1, %v3871_v61  ;;  %v4561_v51 = vrot.slane %v1131_v44, %v4450_v13  ;;  %v4564_v59 = vrot.slane %v1259_v34, %v4450_v13  ;;  %v5452_v1 = vld [vmem:[#allocation54_spill] sm:$0xff]  ;;  %v5454_v61 = vld [vmem:[#allocation55_spill] sm:$0xff] }
 0x1fd   : > { %v1163_v62 = vcombine.low %v3679_v3, %v3873_v0  ;;  %v1075_v55 = vcombine.low %v5451_v52, %v4033_v12  ;;  %v4571_v56 = vrot.slane %v1387_v47, %v4450_v13  ;;  %v1203_v60 = vcombine.low %v5453_v57, %v5452_v1  ;;  %v5458_v12 = vld [vmem:[#allocation15_spill] sm:$0xff]  ;;  %v5470_v52 = vld [vmem:[#allocation18_spill] sm:$0xff] }
 0x1fe   : > { %v4470_v17 = vpop.permute.xlu0 %895  ;;  %5449 = vst [vmem:[#allocation158_spill] sm:$0xff] %v4552_v54  ;;  %v1331_v9 = vcombine.low %v5455_v6, %v5454_v61  ;;  %v4583_v15 = vrot.slane %v1643_v53, %v4450_v13  ;;  %v4586_v3 = vrot.slane %v1771_v43, %v4450_v13  ;;  %v1291_v0 = vcombine.low %v3687_v7, %v5458_v12  ;;  %v5466_v11 = vld [vmem:[#allocation27_spill] sm:$0xff]  ;;  %v5467_v7 = vld [vmem:[#allocation16_spill] sm:$0xff]  ;;  %v5468_v53 = vld [vmem:[#allocation17_spill] sm:$0xff] }
 0x1ff   : > { %v4492_v10 = vpop.permute.xlu1 %897  ;;  %v1459_v25 = vcombine.low %v5460_v23, %v5459_v19  ;;  %v4593_v26 = vrot.slane %v1899_v58, %v4450_v13  ;;  %v4596_v29 = vrot.slane %v2027_v49, %v4450_v13  ;;  %v1587_v27 = vcombine.low %v5464_v35, %v5463_v20  ;;  %v5469_v43 = vld [vmem:[#allocation10_spill] sm:$0xff]  ;;  %v5471_v1 = vld [vmem:[#allocation11_spill] sm:$0xff]  ;;  %v5473_v19 = vld [vmem:[#allocation28_spill] sm:$0xff] }
 0x200   : > { %5457 = vst [vmem:[#allocation54_spill] sm:$0xff] %v4586_v3  ;;  %v1715_v44 = vcombine.low %v5466_v11, %v5465_v40  ;;  %v4605_v47 = vrot.slane %v1163_v62, %v4450_v13  ;;  %v1419_v38 = vcombine.low %v3690_v8, %v5467_v7  ;;  %v1547_v58 = vcombine.low %v5469_v43, %v5468_v53  ;;  %v5472_v12 = vld [vmem:[#allocation59_spill] sm:$0xff]  ;;  %v5475_v35 = vld [vmem:[#allocation12_spill] sm:$0xff]  ;;  %v5476_v11 = vld [vmem:[#allocation61_spill] sm:$0xff] }
 0x201   : > { %5461 = vst [vmem:[#allocation23_spill] sm:$0xff] %v4593_v26  ;;  %5462 = vst [vmem:[#allocation55_spill] sm:$0xff] %v4596_v29  ;;  %v1082_v49 = vrot.slane %v1075_v55, %v4450_v13  ;;  %v1675_v57 = vcombine.low %v5471_v1, %v5470_v52  ;;  %v1210_v61 = vrot.slane %v1203_v60, %v4450_v13  ;;  %v5474_v8 = vld [vmem:[#allocation19_spill] sm:$0xff]  ;;  %v5477_v7 = vld [vmem:[#allocation30_spill] sm:$0xff] }
 0x202   : > { %v4514_v32 = vpop.permute.xlu0 %899  ;;  %v1338_v6 = vrot.slane %v1331_v9, %v4450_v13  ;;  %v1843_v23 = vcombine.low %v5473_v19, %v5472_v12  ;;  %v4621_v20 = vrot.slane %v1291_v0, %v4450_v13  ;;  %v1803_v40 = vcombine.low %v5475_v35, %v5474_v8  ;;  %v5478_v43 = vld [vmem:[#allocation20_spill] sm:$0xff]  ;;  %v5479_v60 = vld [vmem:[#allocation13_spill] sm:$0xff]  ;;  %v5480_v12 = vld [vmem:[#allocation62_spill] sm:$0xff] }
 0x203   : > { %v4536_v39 = vpop.permute.xlu1 %901  ;;  %v1466_v55 = vrot.slane %v1459_v25, %v4450_v13  ;;  %v1107_v53 = vcombine.low %v5477_v7, %v5476_v11  ;;  %v1931_v52 = vcombine.low %v5479_v60, %v5478_v43  ;;  %v1594_v9 = vrot.slane %v1587_v27, %v4450_v13  ;;  %v5481_v19 = vld [vmem:[#allocation31_spill] sm:$0xff]  ;;  %v5482_v35 = vld [vmem:[#allocation60_spill] sm:$0xff]  ;;  %v5483_v11 = vld [vmem:[#allocation29_spill] sm:$0xff] }
 0x204   : > { %v1722_v1 = vrot.slane %v1715_v44, %v4450_v13  ;;  %v1235_v4 = vcombine.low %v5481_v19, %v5480_v12  ;;  %v4637_v29 = vrot.slane %v1419_v38, %v4450_v13  ;;  %v4640_v25 = vrot.slane %v1547_v58, %v4450_v13  ;;  %v5486_v19 = vld [vmem:[#allocation32_spill] sm:$0xff] }
 0x205   : > { %v2219_v8 = vcombine.low %v4473_v21, %v1082_v49  ;;  %v1971_v7 = vcombine.low %v5483_v11, %v5482_v35  ;;  %v4646_v27 = vrot.slane %v1675_v57, %v4450_v13  ;;  %v2236_v44 = vcombine.low %v4505_v31, %v1210_v61  ;;  %v5485_v49 = vld [vmem:[#allocation63_spill] sm:$0xff]  ;;  %v5507_v26 = vld [vmem:[#allocation72_spill] sm:$0xff] }
 0x206   : > { %v4558_v50 = vpop.permute.xlu0 %903  ;;  %v2253_v43 = vcombine.low %v4476_v24, %v1338_v6  ;;  %v1850_v60 = vrot.slane %v1843_v23, %v4450_v13  ;;  %v4654_v38 = vrot.slane %v1803_v40, %v4450_v13  ;;  %v2270_v58 = vcombine.low %v4508_v36, %v1466_v55  ;;  %v5490_v55 = vld [vmem:[#allocation64_spill] sm:$0xff] }
 0x207   : > { %5450 = vst [vmem:[#allocation159_spill] sm:$0xff] %v4558_v50  ;;  %v4580_v2 = vpop.permute.xlu1 %905  ;;  %v1114_v21 = vrot.slane %v1107_v53, %v4450_v13  ;;  %v1363_v35 = vcombine.low %v5486_v19, %v5485_v49  ;;  %v4661_v57 = vrot.slane %v1931_v52, %v4450_v13  ;;  %v2287_v31 = vcombine.low %v4483_v18, %v1594_v9  ;;  %v5491_v53 = vld [vmem:[#allocation33_spill] sm:$0xff] }
 0x208   : > { %5456 = vst [vmem:[#allocation22_spill] sm:$0xff] %v4580_v2  ;;  %5484 = vst [vmem:[#allocation24_spill] sm:$0xff] %v4654_v38  ;;  %v2304_v24 = vcombine.low %v4486_v28, %v1722_v1  ;;  %v1242_v61 = vrot.slane %v1235_v4, %v4450_v13  ;;  %v4671_v36 = vrot.slane %v1971_v7, %v4450_v13  ;;  %v5492_v49 = vld [vmem:[#allocation9_spill] sm:$0xff]  ;;  %v5494_v28 = vld [vmem:[#allocation34_spill] sm:$0xff] }
 0x209   : > { %5487 = vst [vmem:[#allocation15_spill] sm:$0xff] %v4661_v57  ;;  %v1491_v11 = vcombine.low %v5491_v53, %v5490_v55  ;;  %v4676_v52 = vrot.slane %v2219_v8, %v5492_v49  ;;  %v2321_v18 = vcombine.low %v4517_v33, %v1850_v60  ;;  %v5493_v9 = vld [vmem:[#allocation65_spill] sm:$0xff]  ;;  %v4684_v19 = vrot.slane %v2236_v44, %v5492_v49  ;;  %v5495_v53 = vld [vmem:[#allocation66_spill] sm:$0xff]  ;;  %v5496_v8 = vld [vmem:[#allocation35_spill] sm:$0xff] }
 0x20a   : > { %v4602_v34 = vpop.permute.xlu0 %907  ;;  %5489 = vst [vmem:[#allocation56_spill] sm:$0xff] %v4671_v36  ;;  %v1619_v1 = vcombine.low %v5494_v28, %v5493_v9  ;;  %v4687_v40 = vrot.slane %v2253_v43, %v5492_v49  ;;  %v2355_v7 = vcombine.low %v4495_v22, %v1114_v21  ;;  %v1370_v55 = vrot.slane %v1363_v35, %v4450_v13  ;;  %v5497_v9 = vld [vmem:[#allocation67_spill] sm:$0xff]  ;;  %v5498_v28 = vld [vmem:[#allocation36_spill] sm:$0xff]  ;;  %v5512_v36 = vld [vmem:[#allocation37_spill] sm:$0xff] }
 0x20b   : > { %v4618_v62 = vpop.permute.xlu1 %909  ;;  %v1747_v23 = vcombine.low %v5496_v8, %v5495_v53  ;;  %v4694_v33 = vrot.slane %v2270_v58, %v5492_v49  ;;  %v2372_v60 = vcombine.low %v4498_v30, %v1242_v61  ;;  %v1875_v16 = vcombine.low %v5498_v28, %v5497_v9  ;;  %v5501_v58 = vld [vmem:[#allocation69_spill] sm:$0xff]  ;;  %v5502_v53 = vld [vmem:[#allocation38_spill] sm:$0xff]  ;;  %v5504_v61 = vld [vmem:[#allocation39_spill] sm:$0xff] }
 0x20c   : > { %v4702_v43 = vrot.slane %v2287_v31, %v5492_v49  ;;  %v4705_v22 = vrot.slane %v2304_v24, %v5492_v49  ;;  %v1498_v35 = vrot.slane %v1491_v11, %v4450_v13  ;;  %v1139_v8 = vcombine.low %v5502_v53, %v5501_v58  ;;  %v5503_v30 = vld [vmem:[#allocation70_spill] sm:$0xff]  ;;  %v5505_v28 = vld [vmem:[#allocation71_spill] sm:$0xff]  ;;  %v5506_v57 = vld [vmem:[#allocation40_spill] sm:$0xff] }
 0x20d   : > { %v1267_v2 = vcombine.low %v5504_v61, %v5503_v30  ;;  %v1626_v9 = vrot.slane %v1619_v1, %v4450_v13  ;;  %v1395_v31 = vcombine.low %v5506_v57, %v5505_v28  ;;  %v4722_v21 = vrot.slane %v2321_v18, %v5492_v49  ;;  %v5511_v53 = vld [vmem:[#allocation68_spill] sm:$0xff]  ;;  %v5513_v61 = vld [vmem:[#allocation73_spill] sm:$0xff]  ;;  %v5514_v28 = vld [vmem:[#allocation42_spill] sm:$0xff] }
 0x20e   : > { %v4634_v0 = vpop.permute.xlu0 %911  ;;  %5500 = vst [vmem:[#allocation57_spill] sm:$0xff] %v4705_v22  ;;  %v2389_v11 = vcombine.low %v4527_v37, %v1370_v55  ;;  %v1754_v58 = vrot.slane %v1747_v23, %v4450_v13  ;;  %v2003_v30 = vcombine.low %v5512_v36, %v5511_v53  ;;  %v4729_v1 = vrot.slane %v2355_v7, %v5492_v49  ;;  %v5517_v55 = vld [vmem:[#allocation78_spill] sm:$0xff]  ;;  %v5518_v53 = vld [vmem:[#allocation47_spill] sm:$0xff] }
 0x20f   : > { %v4651_v12 = vpop.permute.xlu1 %913  ;;  %5510 = vst [vmem:[#allocation58_spill] sm:$0xff] %v4722_v21  ;;  %v1882_v57 = vrot.slane %v1875_v16, %v4450_v13  ;;  %v4739_v37 = vrot.slane %v2372_v60, %v5492_v49  ;;  %v2406_v23 = vcombine.low %v4530_v45, %v1498_v35  ;;  %v1146_v36 = vrot.slane %v1139_v8, %v4450_v13  ;;  %v5523_v8 = vld [vmem:[#allocation43_spill] sm:$0xff] }
 0x210   : > { %v1274_v7 = vrot.slane %v1267_v2, %v4450_v13  ;;  %v1299_v16 = vcombine.low %v5518_v53, %v5517_v55  ;;  %v2423_v21 = vcombine.low %v4539_v42, %v1626_v9  ;;  %v2440_v45 = vcombine.low %v4542_v48, %v1754_v58  ;;  %v5522_v2 = vld [vmem:[#allocation74_spill] sm:$0xff]  ;;  %v5525_v53 = vld [vmem:[#allocation49_spill] sm:$0xff] }
 0x211   : > { %v4755_v35 = vrot.slane %v2003_v30, %v4450_v13  ;;  %v1779_v38 = vcombine.low %v5523_v8, %v5522_v2  ;;  %v4760_v55 = vrot.slane %v2389_v11, %v5492_v49  ;;  %v2457_v42 = vcombine.low %v4549_v46, %v1882_v57  ;;  %v5532_v8 = vld [vmem:[#allocation85_spill] sm:$0xff] }
 0x212   : > { %v4666_v6 = vpop.permute.xlu0 %915  ;;  %v2491_v48 = vcombine.low %v4561_v51, %v1146_v36  ;;  %v2508_v58 = vcombine.low %v4564_v59, %v1274_v7  ;;  %v1306_v30 = vrot.slane %v1299_v16, %v4450_v13  ;;  %v4773_v11 = vrot.slane %v2406_v23, %v5492_v49  ;;  %v5527_v36 = vld [vmem:[#allocation75_spill] sm:$0xff]  ;;  %v5528_v23 = vld [vmem:[#allocation44_spill] sm:$0xff] }
 0x213   : > { %v4681_v4 = vpop.permute.xlu1 %917  ;;  %5521 = vst [vmem:[#allocation27_spill] sm:$0xff] %v4755_v35  ;;  %v4781_v2 = vrot.slane %v2423_v21, %v5492_v49  ;;  %v4786_v59 = vrot.slane %v1779_v38, %v4450_v13  ;;  %v1907_v7 = vcombine.low %v5528_v23, %v5527_v36  ;;  %v5537_v36 = vld [vmem:[#allocation86_spill] sm:$0xff] }
 0x214   : > { %v2644_v38 = vcombine.low %v4621_v20, %v1306_v30  ;;  %v5541_v35 = vld [vmem:[#allocation150_spill] sm:$0xff] }
 0x215   : > { %5526 = vst [vmem:[#allocation16_spill] sm:$0xff] %v4786_v59  ;;  %v5554_v59 = vld [vmem:[#allocation141_spill] sm:$0xff] }
 0x216   : > { %v4699_v44 = vpop.permute.xlu0 %919 }
 0x217   : > { %5499 = vst [vmem:[#allocation25_spill] sm:$0xff] %v4699_v44  ;;  %v5508_v44 = vld [vmem:[#allocation41_spill] sm:$0xff]  ;;  %v4719_v50 = vpop.permute.xlu1 %921 }
 0x218   : > { %v1523_v24 = vcombine.low %v5508_v44, %v5507_v26  ;;  %5509 = vst [vmem:[#allocation26_spill] sm:$0xff] %v4719_v50  ;;  %v1651_v26 = vcombine.low %v5514_v28, %v5513_v61  ;;  %v5515_v44 = vld [vmem:[#allocation77_spill] sm:$0xff]  ;;  %v1402_v61 = vrot.slane %v1395_v31, %v4450_v13  ;;  %v5519_v28 = vld [vmem:[#allocation79_spill] sm:$0xff] }
 0x219   : > { %v1171_v50 = vcombine.low %v5516_v41, %v5515_v44  ;;  %v5520_v44 = vld [vmem:[#allocation48_spill] sm:$0xff] }
 0x21a   : > { %v4736_v18 = vpop.permute.xlu0 %923  ;;  %v1530_v41 = vrot.slane %v1523_v24, %v4450_v13  ;;  %v1427_v22 = vcombine.low %v5520_v44, %v5519_v28  ;;  %v1658_v9 = vrot.slane %v1651_v26, %v4450_v13  ;;  %v5524_v24 = vld [vmem:[#allocation80_spill] sm:$0xff]  ;;  %v2525_v46 = vcombine.low %v4571_v56, %v1402_v61 }
 0x21b   : > { %v4751_v60 = vpop.permute.xlu1 %925  ;;  %v1178_v31 = vrot.slane %v1171_v50, %v4450_v13  ;;  %v1555_v28 = vcombine.low %v5525_v53, %v5524_v24  ;;  %v4791_v56 = vrot.slane %v2440_v45, %v5492_v49  ;;  %v4799_v61 = vrot.slane %v2457_v42, %v5492_v49 }
 0x21c   : > { %v2542_v57 = vcombine.low %v4574_v63, %v1530_v41  ;;  %v1434_v50 = vrot.slane %v1427_v22, %v4450_v13  ;;  %v2559_v63 = vcombine.low %v4583_v15, %v1658_v9  ;;  %v5531_v41 = vld [vmem:[#allocation117_spill] sm:$0xff]  ;;  %v4805_v53 = vrot.slane %v2491_v48, %v5492_v49  ;;  %v5534_v9 = vld [vmem:[#allocation50_spill] sm:$0xff] }
 0x21d   : > { %5529 = vst [vmem:[#allocation17_spill] sm:$0xff] %v4791_v56  ;;  %v2627_v22 = vcombine.low %v4605_v47, %v1178_v31  ;;  %v1562_v16 = vrot.slane %v1555_v28, %v4450_v13  ;;  %5530 = vst [vmem:[#allocation10_spill] sm:$0xff] %v4799_v61  ;;  %v1083_v24 = vcombine.low %v5532_v8, %v5531_v41  ;;  %v5533_v47 = vld [vmem:[#allocation81_spill] sm:$0xff] }
 0x21e   : > { %v4767_v44 = vpop.permute.xlu0 %927  ;;  %v4808_v45 = vrot.slane %v2508_v58, %v5492_v49  ;;  %v2661_v15 = vcombine.low %v4637_v29, %v1434_v50  ;;  %v1683_v31 = vcombine.low %v5534_v9, %v5533_v47  ;;  %v4814_v42 = vrot.slane %v2525_v46, %v5492_v49  ;;  %v5536_v58 = vld [vmem:[#allocation118_spill] sm:$0xff]  ;;  %v5538_v29 = vld [vmem:[#allocation149_spill] sm:$0xff] }
 0x21f   : > { %v4778_v26 = vpop.permute.xlu1 %929  ;;  %v4817_v20 = vrot.slane %v2542_v57, %v5492_v49  ;;  %v4822_v48 = vrot.slane %v1907_v7, %v4450_v13  ;;  %v1211_v23 = vcombine.low %v5537_v36, %v5536_v58  ;;  %v2678_v41 = vcombine.low %v4640_v25, %v1562_v16  ;;  %v5539_v8 = vld [vmem:[#allocation125_spill] sm:$0xff]  ;;  %v5542_v16 = vld [vmem:[#allocation119_spill] sm:$0xff] }
 0x220   : > { %v5540_v47 = vld [vmem:[#allocation93_spill] sm:$0xff]  ;;  %v4831_v57 = vrot.slane %v2627_v22, %v5492_v49  ;;  %v4834_v51 = vrot.slane %v2559_v63, %v5492_v49  ;;  %v1090_v7 = vrot.slane %v1083_v24, %v4450_v13  ;;  %v4843_v25 = vrot.slane %v1683_v31, %v4450_v13  ;;  %v5543_v36 = vld [vmem:[#allocation87_spill] sm:$0xff]  ;;  %v5544_v22 = vld [vmem:[#allocation126_spill] sm:$0xff] }
 0x221   : > { %5535 = vst [vmem:[#allocation18_spill] sm:$0xff] %v4822_v48  ;;  %v1115_v46 = vcombine.low %v5540_v47, %v5539_v8  ;;  %v5545_v8 = vld [vmem:[#allocation94_spill] sm:$0xff]  ;;  %v4850_v54 = vrot.slane %v2661_v15, %v5492_v49  ;;  %v1218_v24 = vrot.slane %v1211_v23, %v4450_v13  ;;  %v5547_v61 = vld [vmem:[#allocation101_spill] sm:$0xff] }
 0x222   : > { %v4796_v21 = vpop.permute.xlu0 %931  ;;  %v1243_v47 = vcombine.low %v5545_v8, %v5544_v22  ;;  %v5550_v8 = vld [vmem:[#allocation134_spill] sm:$0xff] }
 0x223   : > { %v972_v28 = vpop.permute.xlu1 %971  ;;  %v1122_v31 = vrot.slane %v1115_v46, %v4450_v13  ;;  %v5549_v46 = vld [vmem:[#allocation88_spill] sm:$0xff] }
 0x224   : > { %v1091_v50 = vcombine.low %v5538_v29, %v972_v28  ;;  %v4840_v28 = vrot.slane %v2644_v38, %v5492_v49  ;;  %v1339_v29 = vcombine.low %v5543_v36, %v5542_v16  ;;  %v4859_v36 = vrot.slane %v2678_v41, %v5492_v49 }
 0x226   : > { %v974_v9 = vpop.permute.xlu0 %973  ;;  %v1098_v30 = vrot.slane %v1091_v50, %v4450_v13 }
 0x227   : > { %v1219_v58 = vcombine.low %v5541_v35, %v974_v9  ;;  %v988_v63 = vpop.permute.xlu1 %987  ;;  %v5546_v9 = vld [vmem:[#allocation133_spill] sm:$0xff] }
 0x228   : > { %v2220_v50 = vcombine.low %v1090_v7, %v1098_v30  ;;  %v1123_v38 = vcombine.low %v4447_v5, %v988_v63  ;;  %v1147_v48 = vcombine.low %v5547_v61, %v5546_v9  ;;  %v4865_v7 = vrot.slane %v1339_v29, %v4450_v13  ;;  %v5548_v5 = vld [vmem:[#allocation120_spill] sm:$0xff]  ;;  %v5551_v63 = vld [vmem:[#allocation102_spill] sm:$0xff] }
 0x229   : > { %v1226_v35 = vrot.slane %v1219_v58, %v4450_v13  ;;  %v1467_v58 = vcombine.low %v5549_v46, %v5548_v5  ;;  %v1250_v61 = vrot.slane %v1243_v47, %v4450_v13  ;;  %v1275_v9 = vcombine.low %v5551_v63, %v5550_v8  ;;  %v5555_v5 = vld [vmem:[#allocation109_spill] sm:$0xff] }
 0x22a   : > { %v990_v16 = vpop.permute.xlu0 %989  ;;  %v1130_v15 = vrot.slane %v1123_v38, %v4450_v13  ;;  %v2234_v30 = vrot.slane %v2220_v50, %v5492_v49  ;;  %v5552_v50 = vld [vmem:[#allocation121_spill] sm:$0xff]  ;;  %v1179_v46 = vcombine.low %v5555_v5, %v5554_v59 }
 0x22b   : > { %v2237_v22 = vcombine.low %v1218_v24, %v1226_v35  ;;  %v1251_v23 = vcombine.low %v4460_v14, %v990_v16  ;;  %v1004_v41 = vpop.permute.xlu1 %1003  ;;  %v5553_v38 = vld [vmem:[#allocation89_spill] sm:$0xff]  ;;  %v1154_v16 = vrot.slane %v1147_v48, %v4450_v13 }
 0x22c   : > { %v2356_v56 = vcombine.low %v1122_v31, %v1130_v15  ;;  %v1155_v35 = vcombine.low %v4602_v34, %v1004_v41  ;;  %v2235_v14 = vcombine.low %v4676_v52, %v2234_v30  ;;  %v1595_v29 = vcombine.low %v5553_v38, %v5552_v50  ;;  %v5557_v30 = vld [vmem:[#allocation110_spill] sm:$0xff] }
 0x22d   : > { %v1258_v24 = vrot.slane %v1251_v23, %v4450_v13  ;;  %v2251_v3 = vrot.slane %v2237_v22, %v5492_v49  ;;  %v1282_v52 = vrot.slane %v1275_v9, %v4450_v13  ;;  %v5556_v23 = vld [vmem:[#allocation142_spill] sm:$0xff]  ;;  %v5558_v9 = vld [vmem:[#allocation127_spill] sm:$0xff] }
 0x22e   : > { %v1006_v47 = vpop.permute.xlu0 %1005  ;;  %v1162_v31 = vrot.slane %v1155_v35, %v4450_v13  ;;  %v2796_v34 = vsel %vm2795_vm1, %v2235_v14, -inf  ;;  %v1307_v63 = vcombine.low %v5557_v30, %v5556_v23  ;;  %v2370_v59 = vrot.slane %v2356_v56, %v5492_v49  ;;  %v5559_v35 = vld [vmem:[#allocation95_spill] sm:$0xff] }
 0x22f   : > { %v2373_v8 = vcombine.low %v1250_v61, %v1258_v24  ;;  %v1283_v15 = vcombine.low %v4618_v62, %v1006_v47  ;;  %2797 = vmax.xlane.f32.xlu0 %v2796_v34  ;;  %v1020_v48 = vpop.permute.xlu1 %1019  ;;  %v2252_v41 = vcombine.low %v4684_v19, %v2251_v3  ;;  %v4893_v24 = vrot.slane %v1467_v58, %v4450_v13  ;;  %v5561_v30 = vld [vmem:[#allocation135_spill] sm:$0xff] }
 0x230   : > { %v2492_v50 = vcombine.low %v1154_v16, %v1162_v31  ;;  %v1187_v61 = vcombine.low %v4736_v18, %v1020_v48  ;;  %v1371_v14 = vcombine.low %v5559_v35, %v5558_v9  ;;  %v2371_v3 = vcombine.low %v4729_v1, %v2370_v59  ;;  %v5564_v9 = vld [vmem:[#allocation111_spill] sm:$0xff] }
 0x231   : > { %v1290_v22 = vrot.slane %v1283_v15, %v4450_v13  ;;  %v2387_v62 = vrot.slane %v2373_v8, %v5492_v49  ;;  %v2799_v5 = vsel %vm2795_vm1, %v2252_v41, -inf  ;;  %v1186_v19 = vrot.slane %v1179_v46, %v4450_v13 }
 0x232   : > { %v1022_v38 = vpop.permute.xlu0 %1021  ;;  %v1194_v16 = vrot.slane %v1187_v61, %v4450_v13  ;;  %2800 = vmax.xlane.f32.xlu1 %v2799_v5  ;;  %v4903_v47 = vrot.slane %v1595_v29, %v4450_v13  ;;  %v2820_v58 = vsel %vm2795_vm1, %v2371_v3, -inf  ;;  %v2506_v15 = vrot.slane %v2492_v50, %v5492_v49  ;;  %v5562_v29 = vld [vmem:[#allocation103_spill] sm:$0xff] }
 0x233   : > { %v2509_v56 = vcombine.low %v1282_v52, %v1290_v22  ;;  %v1315_v18 = vcombine.low %v4751_v60, %v1022_v38  ;;  %v976_v8 = vpop.permute.xlu1 %975  ;;  %v2388_v31 = vcombine.low %v4739_v37, %v2387_v62  ;;  %v1314_v1 = vrot.slane %v1307_v63, %v4450_v13  ;;  %2821 = vmax.xlane.f32.xlu0 %v2820_v58  ;;  %v5560_v52 = vld [vmem:[#allocation151_spill] sm:$0xff] }
 0x234   : > { %v2628_v34 = vcombine.low %v1186_v19, %v1194_v16  ;;  %v1347_v23 = vcombine.low %v5560_v52, %v976_v8  ;;  %v1378_v60 = vrot.slane %v1371_v14, %v4450_v13  ;;  %v1403_v48 = vcombine.low %v5562_v29, %v5561_v30  ;;  %v5563_v62 = vld [vmem:[#allocation143_spill] sm:$0xff]  ;;  %v5566_v16 = vld [vmem:[#allocation96_spill] sm:$0xff] }
 0x235   : > { %v1322_v46 = vrot.slane %v1315_v18, %v4450_v13  ;;  %v2507_v59 = vcombine.low %v4805_v53, %v2506_v15  ;;  %v2523_v37 = vrot.slane %v2509_v56, %v5492_v49  ;;  %v1435_v35 = vcombine.low %v5564_v9, %v5563_v62  ;;  %v5565_v56 = vld [vmem:[#allocation128_spill] sm:$0xff] }
 0x236   : > { %v992_v41 = vpop.permute.xlu0 %991  ;;  %v1354_v50 = vrot.slane %v1347_v23, %v4450_v13  ;;  %v2642_v61 = vrot.slane %v2628_v34, %v5492_v49  ;;  %v2823_v14 = vsel %vm2795_vm1, %v2388_v31, -inf  ;;  %v1499_v18 = vcombine.low %v5566_v16, %v5565_v56  ;;  %v5572_v56 = vld [vmem:[#allocation129_spill] sm:$0xff] }
 0x237   : > { %v2645_v22 = vcombine.low %v1314_v1, %v1322_v46  ;;  %v1379_v63 = vcombine.low %v4470_v17, %v992_v41  ;;  %v2844_v38 = vsel %vm2795_vm1, %v2507_v59, -inf  ;;  %v1008_v5 = vpop.permute.xlu1 %1007  ;;  %v2524_v3 = vcombine.low %v4808_v45, %v2523_v37  ;;  %2824 = vmax.xlane.f32.xlu0 %v2823_v14  ;;  %v5568_v41 = vld [vmem:[#allocation136_spill] sm:$0xff]  ;;  %v5573_v16 = vld [vmem:[#allocation97_spill] sm:$0xff] }
 0x238   : > { %v2254_v53 = vcombine.low %v4865_v7, %v1354_v50  ;;  %2845 = vmax.xlane.f32.xlu1 %v2844_v38  ;;  %v1411_v17 = vcombine.low %v4634_v0, %v1008_v5  ;;  %v1410_v58 = vrot.slane %v1403_v48, %v4450_v13  ;;  %v2643_v31 = vcombine.low %v4831_v57, %v2642_v61  ;;  %v5569_v59 = vld [vmem:[#allocation104_spill] sm:$0xff] }
 0x239   : > { %v1386_v19 = vrot.slane %v1379_v63, %v4450_v13  ;;  %v2659_v15 = vrot.slane %v2645_v22, %v5492_v49  ;;  %v1442_v46 = vrot.slane %v1435_v35, %v4450_v13  ;;  %v2847_v0 = vsel %vm2795_vm1, %v2524_v3, -inf  ;;  %v5570_v35 = vld [vmem:[#allocation144_spill] sm:$0xff] }
 0x23a   : > { %v1024_v8 = vpop.permute.xlu0 %1023  ;;  %v1418_v45 = vrot.slane %v1411_v17, %v4450_v13  ;;  %v2268_v34 = vrot.slane %v2254_v53, %v5492_v49  ;;  %v2868_v52 = vsel %vm2795_vm1, %v2643_v31, -inf  ;;  %v1531_v37 = vcombine.low %v5569_v59, %v5568_v41  ;;  %v5571_v14 = vld [vmem:[#allocation112_spill] sm:$0xff] }
 0x23b   : > { %v2390_v1 = vcombine.low %v1378_v60, %v1386_v19  ;;  %v1443_v7 = vcombine.low %v4767_v44, %v1024_v8  ;;  %v978_v23 = vpop.permute.xlu1 %977  ;;  %v2660_v30 = vcombine.low %v4840_v28, %v2659_v15  ;;  %2848 = vmax.xlane.f32.xlu0 %v2847_v0  ;;  %v5567_v60 = vld [vmem:[#allocation152_spill] sm:$0xff]  ;;  %v1506_v44 = vrot.slane %v1499_v18, %v4450_v13 }
 0x23c   : > { %v2526_v29 = vcombine.low %v1410_v58, %v1418_v45  ;;  %2869 = vmax.xlane.f32.xlu1 %v2868_v52  ;;  %v1475_v48 = vcombine.low %v5567_v60, %v978_v23  ;;  %v2269_v50 = vcombine.low %v4687_v40, %v2268_v34  ;;  %v1563_v38 = vcombine.low %v5571_v14, %v5570_v35  ;;  %v5574_v23 = vld [vmem:[#allocation153_spill] sm:$0xff] }
 0x23d   : > { %v1450_v57 = vrot.slane %v1443_v7, %v4450_v13  ;;  %v2404_v63 = vrot.slane %v2390_v1, %v5492_v49  ;;  %v2871_v5 = vsel %vm2795_vm1, %v2660_v30, -inf  ;;  %v1627_v18 = vcombine.low %v5573_v16, %v5572_v56 }
 0x23e   : > { %v994_v22 = vpop.permute.xlu0 %993  ;;  %v1482_v28 = vrot.slane %v1475_v48, %v4450_v13  ;;  %v2540_v9 = vrot.slane %v2526_v29, %v5492_v49  ;;  %v2802_v3 = vsel %vm2795_vm1, %v2269_v50, -inf  ;;  %v1538_v58 = vrot.slane %v1531_v37, %v4450_v13  ;;  %v5575_v29 = vld [vmem:[#allocation137_spill] sm:$0xff] }
 0x23f   : > { %v2662_v61 = vcombine.low %v1442_v46, %v1450_v57  ;;  %v1507_v62 = vcombine.low %v4492_v10, %v994_v22  ;;  %v1010_v53 = vpop.permute.xlu1 %1009  ;;  %v2405_v19 = vcombine.low %v4760_v55, %v2404_v63  ;;  %2872 = vmax.xlane.f32.xlu0 %v2871_v5  ;;  %v1570_v7 = vrot.slane %v1563_v38, %v4450_v13  ;;  %v5576_v57 = vld [vmem:[#allocation105_spill] sm:$0xff]  ;;  %v5579_v38 = vld [vmem:[#allocation122_spill] sm:$0xff] }
 0x240   : > { %v2271_v40 = vcombine.low %v4893_v24, %v1482_v28  ;;  %2803 = vmax.xlane.f32.xlu1 %v2802_v3  ;;  %v1539_v10 = vcombine.low %v4651_v12, %v1010_v53  ;;  %v2541_v31 = vcombine.low %v4814_v42, %v2540_v9  ;;  %v1659_v60 = vcombine.low %v5576_v57, %v5575_v29  ;;  %v5577_v50 = vld [vmem:[#allocation145_spill] sm:$0xff]  ;;  %v5580_v5 = vld [vmem:[#allocation90_spill] sm:$0xff] }
 0x241   : > { %v1514_v17 = vrot.slane %v1507_v62, %v4450_v13  ;;  %v2676_v15 = vrot.slane %v2662_v61, %v5492_v49  ;;  %v2826_v12 = vsel %vm2795_vm1, %v2405_v19, -inf  ;;  %v5578_v63 = vld [vmem:[#allocation113_spill] sm:$0xff]  ;;  %v1723_v3 = vcombine.low %v5580_v5, %v5579_v38  ;;  %v5590_v5 = vld [vmem:[#allocation83_spill] sm:$0xff] }
 0x242   : > { %v1026_v8 = vpop.permute.xlu0 %1025  ;;  %v1546_v55 = vrot.slane %v1539_v10, %v4450_v13  ;;  %v2285_v45 = vrot.slane %v2271_v40, %v5492_v49  ;;  %v2850_v34 = vsel %vm2795_vm1, %v2541_v31, -inf  ;;  %v1691_v61 = vcombine.low %v5578_v63, %v5577_v50 }
 0x243   : > { %v2407_v1 = vcombine.low %v1506_v44, %v1514_v17  ;;  %v1571_v24 = vcombine.low %v4778_v26, %v1026_v8  ;;  %v980_v46 = vpop.permute.xlu1 %979  ;;  %v2677_v0 = vcombine.low %v4850_v54, %v2676_v15  ;;  %2827 = vmax.xlane.f32.xlu0 %v2826_v12  ;;  %v1634_v26 = vrot.slane %v1627_v18, %v4450_v13 }
 0x244   : > { %v2543_v52 = vcombine.low %v1538_v58, %v1546_v55  ;;  %2851 = vmax.xlane.f32.xlu1 %v2850_v34  ;;  %v1603_v30 = vcombine.low %v5574_v23, %v980_v46  ;;  %v2286_v44 = vcombine.low %v4694_v33, %v2285_v45  ;;  %v1666_v53 = vrot.slane %v1659_v60, %v4450_v13  ;;  %v5582_v55 = vld [vmem:[#allocation51_spill] sm:$0xff]  ;;  %v5583_v45 = vld [vmem:[#allocation130_spill] sm:$0xff] }
 0x245   : > { %v1578_v42 = vrot.slane %v1571_v24, %v4450_v13  ;;  %v2421_v41 = vrot.slane %v2407_v1, %v5492_v49  ;;  %v2874_v28 = vsel %vm2795_vm1, %v2677_v0, -inf  ;;  %v1698_v16 = vrot.slane %v1691_v61, %v4450_v13  ;;  %v5581_v1 = vld [vmem:[#allocation82_spill] sm:$0xff] }
 0x246   : > { %v996_v48 = vpop.permute.xlu0 %995  ;;  %v1610_v54 = vrot.slane %v1603_v30, %v4450_v13  ;;  %v2557_v22 = vrot.slane %v2543_v52, %v5492_v49  ;;  %v2805_v62 = vsel %vm2795_vm1, %v2286_v44, -inf  ;;  %v1811_v24 = vcombine.low %v5582_v55, %v5581_v1  ;;  %v5585_v0 = vld [vmem:[#allocation154_spill] sm:$0xff] }
 0x247   : > { %v2679_v59 = vcombine.low %v1570_v7, %v1578_v42  ;;  %v1635_v37 = vcombine.low %v4514_v32, %v996_v48  ;;  %v1012_v9 = vpop.permute.xlu1 %1011  ;;  %v2422_v35 = vcombine.low %v4773_v11, %v2421_v41  ;;  %2875 = vmax.xlane.f32.xlu0 %v2874_v28  ;;  %v5584_v7 = vld [vmem:[#allocation98_spill] sm:$0xff] }
 0x248   : > { %v2288_v33 = vcombine.low %v4903_v47, %v1610_v54  ;;  %2806 = vmax.xlane.f32.xlu1 %v2805_v62  ;;  %v1667_v32 = vcombine.low %v4666_v6, %v1012_v9  ;;  %v2558_v40 = vcombine.low %v4817_v20, %v2557_v22  ;;  %v1755_v12 = vcombine.low %v5584_v7, %v5583_v45  ;;  %v5586_v30 = vld [vmem:[#allocation138_spill] sm:$0xff]  ;;  %v5600_v45 = vld [vmem:[#allocation57_spill] sm:$0xff] }
 0x249   : > { %v1642_v14 = vrot.slane %v1635_v37, %v4450_v13  ;;  %v2693_v17 = vrot.slane %v2679_v59, %v5492_v49  ;;  %v2829_v6 = vsel %vm2795_vm1, %v2422_v35, -inf  ;;  %v5588_v59 = vld [vmem:[#allocation146_spill] sm:$0xff] }
 0x24a   : > { %v1028_v19 = vpop.permute.xlu0 %1027  ;;  %v1674_v11 = vrot.slane %v1667_v32, %v4450_v13  ;;  %v2302_v56 = vrot.slane %v2288_v33, %v5492_v49  ;;  %v2853_v18 = vsel %vm2795_vm1, %v2558_v40, -inf  ;;  %v1762_v41 = vrot.slane %v1755_v12, %v4450_v13  ;;  %v5589_v54 = vld [vmem:[#allocation114_spill] sm:$0xff] }
 0x24b   : > { %v2424_v10 = vcombine.low %v1634_v26, %v1642_v14  ;;  %v1699_v47 = vcombine.low %v4796_v21, %v1028_v19  ;;  %v934_v58 = vpop.permute.xlu1 %933  ;;  %v2694_v8 = vcombine.low %v4859_v36, %v2693_v17  ;;  %2830 = vmax.xlane.f32.xlu0 %v2829_v6  ;;  %v2695_v21 = vcombine.low %v4646_v27, %v4843_v25  ;;  %v5587_v27 = vld [vmem:[#allocation106_spill] sm:$0xff]  ;;  %v5593_v19 = vld [vmem:[#allocation91_spill] sm:$0xff] }
 0x24c   : > { %v2560_v31 = vcombine.low %v1666_v53, %v1674_v11  ;;  %2854 = vmax.xlane.f32.xlu1 %v2853_v18  ;;  %v2303_v15 = vcombine.low %v4702_v43, %v2302_v56  ;;  %v1730_v43 = vrot.slane %v1723_v3, %v4450_v13  ;;  %v1787_v25 = vcombine.low %v5587_v27, %v5586_v30  ;;  %v5591_v3 = vld [vmem:[#allocation52_spill] sm:$0xff]  ;;  %v5594_v11 = vld [vmem:[#allocation54_spill] sm:$0xff]  ;;  %v5604_v30 = vld [vmem:[#allocation107_spill] sm:$0xff] }
 0x24d   : > { %v1706_v20 = vrot.slane %v1699_v47, %v4450_v13  ;;  %v2438_v46 = vrot.slane %v2424_v10, %v5492_v49  ;;  %v2877_v26 = vsel %vm2795_vm1, %v2694_v8, -inf  ;;  %v1819_v37 = vcombine.low %v5589_v54, %v5588_v59  ;;  %v5595_v47 = vld [vmem:[#allocation16_spill] sm:$0xff]  ;;  %v5606_v59 = vld [vmem:[#allocation147_spill] sm:$0xff] }
 0x24e   : > { %v982_v34 = vpop.permute.xlu0 %981  ;;  %v2808_v42 = vsel %vm2795_vm1, %v2303_v15, -inf  ;;  %v2574_v23 = vrot.slane %v2560_v31, %v5492_v49  ;;  %v2703_v50 = vrot.slane %v2695_v21, %v5492_v49  ;;  %v1939_v53 = vcombine.low %v5591_v3, %v5590_v5  ;;  %v5597_v31 = vld [vmem:[#allocation24_spill] sm:$0xff]  ;;  %v5598_v15 = vld [vmem:[#allocation131_spill] sm:$0xff] }
 0x24f   : > { %v2696_v36 = vcombine.low %v1698_v16, %v1706_v20  ;;  %v1731_v52 = vcombine.low %v5585_v0, %v982_v34  ;;  %v998_v29 = vpop.permute.xlu1 %997  ;;  %v2439_v57 = vcombine.low %v4781_v2, %v2438_v46  ;;  %2878 = vmax.xlane.f32.xlu0 %v2877_v26  ;;  %v5596_v56 = vcombine.low %v5594_v11, %v5595_v47  ;;  %v5599_v21 = vld [vmem:[#allocation99_spill] sm:$0xff]  ;;  %v5614_v47 = vld [vmem:[#allocation124_spill] sm:$0xff] }
 0x250   : > { %2809 = vmax.xlane.f32.xlu1 %v2808_v42  ;;  %v1763_v48 = vcombine.low %v4536_v39, %v998_v29  ;;  %v2575_v44 = vcombine.low %v4834_v51, %v2574_v23  ;;  %v1818_v39 = vrot.slane %v1811_v24, %v4450_v13  ;;  %v1794_v51 = vrot.slane %v1787_v25, %v4450_v13  ;;  %v5601_v34 = vld [vmem:[#allocation155_spill] sm:$0xff] }
 0x251   : > { %v1738_v60 = vrot.slane %v1731_v52, %v4450_v13  ;;  %v2710_v63 = vrot.slane %v2696_v36, %v5492_v49  ;;  %v2832_v9 = vsel %vm2795_vm1, %v2439_v57, -inf  ;;  %v2584_v16 = vrot.slane %v5596_v56, %v5492_v49  ;;  %v5602_v36 = vld [vmem:[#allocation17_spill] sm:$0xff]  ;;  %v5605_v57 = vld [vmem:[#allocation159_spill] sm:$0xff]  ;;  %v5615_v56 = vld [vmem:[#allocation92_spill] sm:$0xff] }
 0x252   : > { %v1014_v22 = vpop.permute.xlu0 %1013  ;;  %v1770_v2 = vrot.slane %v1763_v48, %v4450_v13  ;;  %v2856_v62 = vsel %vm2795_vm1, %v2575_v44, -inf  ;;  %v1826_v6 = vrot.slane %v1819_v37, %v4450_v13  ;;  %v2712_v20 = vcombine.low %v5597_v31, %v1818_v39  ;;  %v5607_v54 = vld [vmem:[#allocation115_spill] sm:$0xff] }
 0x253   : > { %v2305_v61 = vcombine.low %v1730_v43, %v1738_v60  ;;  %v1795_v28 = vcombine.low %v4681_v4, %v1014_v22  ;;  %v1030_v35 = vpop.permute.xlu1 %1029  ;;  %v2711_v33 = vcombine.low %v2703_v50, %v2710_v63  ;;  %2833 = vmax.xlane.f32.xlu0 %v2832_v9  ;;  %v5592_v4 = vld [vmem:[#allocation123_spill] sm:$0xff]  ;;  %v1883_v1 = vcombine.low %v5599_v21, %v5598_v15 }
 0x254   : > { %v2441_v14 = vcombine.low %v1762_v41, %v1770_v2  ;;  %2857 = vmax.xlane.f32.xlu1 %v2856_v62  ;;  %v1827_v38 = vcombine.low %v934_v58, %v1030_v35  ;;  %v1851_v40 = vcombine.low %v5593_v19, %v5592_v4  ;;  %v1946_v42 = vrot.slane %v1939_v53, %v4450_v13  ;;  %v5603_v43 = vld [vmem:[#allocation139_spill] sm:$0xff] }
 0x255   : > { %v1802_v32 = vrot.slane %v1795_v28, %v4450_v13  ;;  %v2319_v10 = vrot.slane %v2305_v61, %v5492_v49  ;;  %v2880_v55 = vsel %vm2795_vm1, %v2711_v33, -inf  ;;  %v1915_v27 = vcombine.low %v5604_v30, %v5603_v43  ;;  %v5608_v28 = vld [vmem:[#allocation25_spill] sm:$0xff]  ;;  %v5610_v9 = vld [vmem:[#allocation23_spill] sm:$0xff]  ;;  %v5611_v33 = vld [vmem:[#allocation76_spill] sm:$0xff] }
 0x256   : > { %v936_v17 = vpop.permute.xlu0 %935  ;;  %v1834_v8 = vrot.slane %v1827_v38, %v4450_v13  ;;  %v2455_v58 = vrot.slane %v2441_v14, %v5492_v49  ;;  %v1858_v23 = vrot.slane %v1851_v40, %v4450_v13  ;;  %v1890_v41 = vrot.slane %v1883_v1, %v4450_v13  ;;  %v5612_v14 = vld [vmem:[#allocation45_spill] sm:$0xff]  ;;  %v5617_v1 = vld [vmem:[#allocation84_spill] sm:$0xff] }
 0x257   : > { %v2577_v18 = vcombine.low %v1794_v51, %v1802_v32  ;;  %v984_v24 = vpop.permute.xlu1 %983  ;;  %v2320_v7 = vcombine.low %v5600_v45, %v2319_v10  ;;  %2881 = vmax.xlane.f32.xlu0 %v2880_v55  ;;  %v1947_v37 = vcombine.low %v5607_v54, %v5606_v59  ;;  %v2720_v50 = vrot.slane %v2712_v20, %v5492_v49  ;;  %v5609_v51 = vld [vmem:[#allocation18_spill] sm:$0xff]  ;;  %v5613_v10 = vld [vmem:[#allocation15_spill] sm:$0xff]  ;;  %v5618_v55 = vld [vmem:[#allocation53_spill] sm:$0xff] }
 0x258   : > { %v2713_v12 = vcombine.low %v1826_v6, %v1834_v8  ;;  %v1859_v46 = vcombine.low %v5601_v34, %v984_v24  ;;  %v2456_v0 = vcombine.low %v5602_v36, %v2455_v58  ;;  %v2593_v35 = vcombine.low %v5610_v9, %v5609_v51  ;;  %v5616_v20 = vld [vmem:[#allocation58_spill] sm:$0xff]  ;;  %v5619_v45 = vld [vmem:[#allocation132_spill] sm:$0xff] }
 0x259   : > { %v2591_v52 = vrot.slane %v2577_v18, %v5492_v49  ;;  %v2811_v26 = vsel %vm2795_vm1, %v2320_v7, -inf  ;;  %v2035_v32 = vcombine.low %v5612_v14, %v5611_v33  ;;  %v1922_v38 = vrot.slane %v1915_v27, %v4450_v13  ;;  %v5620_v7 = vld [vmem:[#allocation100_spill] sm:$0xff]  ;;  %v5628_v51 = vld [vmem:[#allocation26_spill] sm:$0xff]  ;;  %v5630_v14 = vld [vmem:[#allocation21_spill] sm:$0xff] }
 0x25a   : > { %v1000_v25 = vpop.permute.xlu0 %999  ;;  %v1866_v29 = vrot.slane %v1859_v46, %v4450_v13  ;;  %2812 = vmax.xlane.f32.xlu1 %v2811_v26  ;;  %v2835_v48 = vsel %vm2795_vm1, %v2456_v0, -inf  ;;  %v2727_v63 = vrot.slane %v2713_v12, %v5492_v49  ;;  %v2729_v11 = vcombine.low %v5613_v10, %v1946_v42  ;;  %v5621_v0 = vld [vmem:[#allocation156_spill] sm:$0xff]  ;;  %v5629_v33 = vld [vmem:[#allocation14_spill] sm:$0xff] }
 0x25b   : > { %v1891_v60 = vcombine.low %v5605_v57, %v1000_v25  ;;  %v2592_v44 = vcombine.low %v2584_v16, %v2591_v52  ;;  %v1016_v22 = vpop.permute.xlu1 %1015  ;;  %2836 = vmax.xlane.f32.xlu0 %v2835_v48  ;;  %v1979_v16 = vcombine.low %v5615_v56, %v5614_v47  ;;  %v1954_v6 = vrot.slane %v1947_v37, %v4450_v13  ;;  %v5623_v27 = vld [vmem:[#allocation140_spill] sm:$0xff] }
 0x25c   : > { %v2322_v61 = vcombine.low %v1858_v23, %v1866_v29  ;;  %v1923_v62 = vcombine.low %v5608_v28, %v1016_v22  ;;  %v2728_v3 = vcombine.low %v2720_v50, %v2727_v63  ;;  %v2042_v21 = vrot.slane %v2035_v32, %v4450_v13  ;;  %v5622_v23 = vld [vmem:[#allocation10_spill] sm:$0xff]  ;;  %v5624_v25 = vld [vmem:[#allocation108_spill] sm:$0xff] }
 0x25d   : > { %v1898_v2 = vrot.slane %v1891_v60, %v4450_v13  ;;  %v2859_v39 = vsel %vm2795_vm1, %v2592_v44, -inf  ;;  %v2067_v24 = vcombine.low %v5618_v55, %v5617_v1  ;;  %v2011_v12 = vcombine.low %v5620_v7, %v5619_v45  ;;  %v5625_v44 = vld [vmem:[#allocation22_spill] sm:$0xff]  ;;  %v5626_v50 = vld [vmem:[#allocation148_spill] sm:$0xff] }
 0x25e   : > { %v1032_v5 = vpop.permute.xlu0 %1031  ;;  %v1930_v4 = vrot.slane %v1923_v62, %v4450_v13  ;;  %2860 = vmax.xlane.f32.xlu1 %v2859_v39  ;;  %v2336_v40 = vrot.slane %v2322_v61, %v5492_v49  ;;  %v2883_v18 = vsel %vm2795_vm1, %v2728_v3, -inf  ;;  %v2601_v46 = vrot.slane %v2593_v35, %v5492_v49  ;;  %v5627_v63 = vld [vmem:[#allocation116_spill] sm:$0xff] }
 0x25f   : > { %v2458_v53 = vcombine.low %v1890_v41, %v1898_v2  ;;  %v1955_v19 = vcombine.low %v936_v17, %v1032_v5  ;;  %v938_v8 = vpop.permute.xlu1 %937  ;;  %2884 = vmax.xlane.f32.xlu0 %v2883_v18  ;;  %v1986_v30 = vrot.slane %v1979_v16, %v4450_v13  ;;  %v2043_v26 = vcombine.low %v5624_v25, %v5623_v27  ;;  %v5632_v5 = vld [vmem:[#allocation55_spill] sm:$0xff]  ;;  %v5633_v16 = vld [vmem:[#allocation157_spill] sm:$0xff] }
 0x260   : > { %v2594_v58 = vcombine.low %v1922_v38, %v1930_v4  ;;  %v2337_v15 = vcombine.low %v5616_v20, %v2336_v40  ;;  %v2737_v60 = vrot.slane %v2729_v11, %v5492_v49  ;;  %v2074_v37 = vrot.slane %v2067_v24, %v4450_v13  ;;  %v5636_v20 = vld [vmem:[#allocation158_spill] sm:$0xff] }
 0x261   : > { %v1962_v31 = vrot.slane %v1955_v19, %v4450_v13  ;;  %v2472_v17 = vrot.slane %v2458_v53, %v5492_v49  ;;  %v2018_v22 = vrot.slane %v2011_v12, %v4450_v13  ;;  %v2075_v61 = vcombine.low %v5627_v63, %v5626_v50 }
 0x262   : > { %v986_v34 = vpop.permute.xlu0 %985  ;;  %v2814_v42 = vsel %vm2795_vm1, %v2337_v15, -inf  ;;  %v2608_v57 = vrot.slane %v2594_v58, %v5492_v49  ;;  %v5631_v32 = vcombine.low %v5629_v33, %v5630_v14  ;;  %v2610_v3 = vcombine.low %v5632_v5, %v2042_v21  ;;  %v5637_v15 = vld [vmem:[#allocation27_spill] sm:$0xff] }
 0x263   : > { %v2730_v36 = vcombine.low %v1954_v6, %v1962_v31  ;;  %v1987_v52 = vcombine.low %v5621_v0, %v986_v34  ;;  %v2473_v43 = vcombine.low %v5622_v23, %v2472_v17  ;;  %2815 = vmax.xlane.f32.xlu1 %v2814_v42  ;;  %v1002_v29 = vpop.permute.xlu1 %1001  ;;  %v2050_v53 = vrot.slane %v2043_v26, %v4450_v13  ;;  %v5634_v6 = vld [vmem:[#allocation56_spill] sm:$0xff] }
 0x264   : > { %v2019_v41 = vcombine.low %v5625_v44, %v1002_v29  ;;  %v2609_v28 = vcombine.low %v2601_v46, %v2608_v57  ;;  %v2066_v38 = vrot.slane %v5631_v32, %v4450_v13  ;;  %v5635_v18 = vcombine.low %v5633_v16, %v5634_v6  ;;  %v5640_v32 = vld [vmem:[#allocation8_spill] sm:$0xff] }
 0x265   : > { %v1994_v48 = vrot.slane %v1987_v52, %v4450_v13  ;;  %v2838_v59 = vsel %vm2795_vm1, %v2473_v43, -inf  ;;  %v2744_v54 = vrot.slane %v2730_v36, %v5492_v49  ;;  %v5638_v17 = vcombine.low %v5636_v20, %v5637_v15 }
 0x266   : > { %v1018_v2 = vpop.permute.xlu0 %1017  ;;  %2839 = vmax.xlane.f32.xlu0 %v2838_v59  ;;  %v2026_v39 = vrot.slane %v2019_v41, %v4450_v13  ;;  %v2862_v4 = vsel %vm2795_vm1, %v2609_v28, -inf  ;;  %v2746_v56 = vcombine.low %v2066_v38, %v2074_v37  ;;  %v2346_v58 = vrot.slane %v5635_v18, %v5492_v49 }
 0x267   : > { %v2339_v62 = vcombine.low %v1986_v30, %v1994_v48  ;;  %v2051_v9 = vcombine.low %v5628_v51, %v1018_v2  ;;  %v2745_v35 = vcombine.low %v2737_v60, %v2744_v54  ;;  %v1034_v19 = vpop.permute.xlu1 %1033  ;;  %2863 = vmax.xlane.f32.xlu1 %v2862_v4  ;;  %v2482_v21 = vrot.slane %v5638_v17, %v5492_v49 }
 0x268   : > { %v2475_v40 = vcombine.low %v2018_v22, %v2026_v39  ;;  %v2083_v11 = vcombine.low %v938_v8, %v1034_v19  ;;  %v2082_v1 = vrot.slane %v2075_v61, %v4450_v13  ;;  %v2618_v34 = vrot.slane %v2610_v3, %v5492_v49 }
 0x269   : > { %v2058_v10 = vrot.slane %v2051_v9, %v4450_v13  ;;  %v2886_v47 = vsel %vm2795_vm1, %v2745_v35, -inf  ;;  %v2353_v31 = vrot.slane %v2339_v62, %v5492_v49  ;;  %v2754_v42 = vrot.slane %v2746_v56, %v5492_v49 }
 0x26a   : > { %2887 = vmax.xlane.f32.xlu0 %v2886_v47  ;;  %v2090_v8 = vrot.slane %v2083_v11, %v4450_v13  ;;  %v2489_v24 = vrot.slane %v2475_v40, %v5492_v49  ;;  %v5639_v9 = vlaneseq }
 0x26b   : > { %v2611_v55 = vcombine.low %v2050_v53, %v2058_v10  ;;  %v2354_v45 = vcombine.low %v2346_v58, %v2353_v31 }
 0x26c   : > { %v2747_v7 = vcombine.low %v2082_v1, %v2090_v8  ;;  %v2490_v12 = vcombine.low %v2482_v21, %v2489_v24  ;;  %v2925_v35 = vand.u32 127, %v5639_v9 }
 0x26d   : > { %v2625_v46 = vrot.slane %v2611_v55, %v5492_v49  ;;  %v2817_v36 = vsel %vm2795_vm1, %v2354_v45, -inf }
 0x26e   : > { %2818 = vmax.xlane.f32.xlu1 %v2817_v36  ;;  %v2841_v0 = vsel %vm2795_vm1, %v2490_v12, -inf  ;;  %v2761_v23 = vrot.slane %v2747_v7, %v5492_v49  ;;  %v5149_v38 = vsub.s32 %v2925_v35, %v5640_v32 }
 0x26f   : > { %v2626_v52 = vcombine.low %v2618_v34, %v2625_v46  ;;  %2842 = vmax.xlane.f32.xlu0 %v2841_v0 }
 0x270   : > { %v2762_v43 = vcombine.low %v2754_v42, %v2761_v23 }
 0x271   : > { %v2865_v13 = vsel %vm2795_vm1, %v2626_v52, -inf }
 0x272   : > { %2866 = vmax.xlane.f32.xlu1 %v2865_v13  ;;  %v2889_v30 = vsel %vm2795_vm1, %v2762_v43, -inf }
 0x273   : > { %2890 = vmax.xlane.f32.xlu0 %v2889_v30 }
 0x2b8   : > { %v2798_v27 = vpop.xlane.xlu0 %2797 }
 0x2b9   : > { %v2929_v19 = vrot.slane %v2798_v27, %v5149_v38 }
 0x2bb   : > { %v2801_v25 = vpop.xlane.xlu1 %2800 }
 0x2bc   : > { %v2822_v26 = vpop.xlane.xlu0 %2821  ;;  %v2933_v3 = vrot.slane %v2801_v25, %v5149_v38 }
 0x2bd   : > { %v2961_v11 = vrot.slane %v2822_v26, %v5149_v38 }
 0x2be   : > { %v3055_v20 = vsel %vm3054_vm2, %v2933_v3, %v2929_v19 }
 0x2c0   : > { %v2825_v29 = vpop.xlane.xlu0 %2824 }
 0x2c1   : > { %v2846_v57 = vpop.xlane.xlu1 %2845  ;;  %v2965_v53 = vrot.slane %v2825_v29, %v5149_v38 }
 0x2c2   : > { %v2993_v47 = vrot.slane %v2846_v57, %v5149_v38 }
 0x2c3   : > { %v3068_v15 = vsel %vm3054_vm2, %v2965_v53, %v2961_v11 }
 0x2c4   : > { %v2849_v60 = vpop.xlane.xlu0 %2848 }
 0x2c5   : > { %v2870_v48 = vpop.xlane.xlu1 %2869  ;;  %v2997_v40 = vrot.slane %v2849_v60, %v5149_v38 }
 0x2c6   : > { %v3025_v6 = vrot.slane %v2870_v48, %v5149_v38 }
 0x2c7   : > { %v3075_v21 = vsel %vm3054_vm2, %v2997_v40, %v2993_v47 }
 0x2c8   : > { %v2873_v44 = vpop.xlane.xlu0 %2872 }
 0x2c9   : > { %v2804_v41 = vpop.xlane.xlu1 %2803  ;;  %v3029_v10 = vrot.slane %v2873_v44, %v5149_v38 }
 0x2ca   : > { %v2937_v56 = vrot.slane %v2804_v41, %v5149_v38 }
 0x2cb   : > { %v3082_v1 = vsel %vm3054_vm2, %v3029_v10, %v3025_v6 }
 0x2cc   : > { %v2828_v59 = vpop.xlane.xlu0 %2827  ;;  %v3057_v45 = vsel %vm3056_vm3, %v2937_v56, %v3055_v20 }
 0x2cd   : > { %v2852_v54 = vpop.xlane.xlu1 %2851  ;;  %v2969_v16 = vrot.slane %v2828_v59, %v5149_v38 }
 0x2ce   : > { %v3001_v18 = vrot.slane %v2852_v54, %v5149_v38 }
 0x2cf   : > { %v3069_v7 = vsel %vm3056_vm3, %v2969_v16, %v3068_v15 }
 0x2d0   : > { %v2876_v49 = vpop.xlane.xlu0 %2875  ;;  %v3076_v36 = vsel %vm3056_vm3, %v3001_v18, %v3075_v21 }
 0x2d1   : > { %v2807_v37 = vpop.xlane.xlu1 %2806  ;;  %v3033_v58 = vrot.slane %v2876_v49, %v5149_v38 }
 0x2d2   : > { %v2941_v31 = vrot.slane %v2807_v37, %v5149_v38 }
 0x2d3   : > { %v3083_v0 = vsel %vm3056_vm3, %v3033_v58, %v3082_v1 }
 0x2d4   : > { %v2831_v22 = vpop.xlane.xlu0 %2830  ;;  %v3059_v52 = vsel %vm3058_vm4, %v2941_v31, %v3057_v45 }
 0x2d5   : > { %v5135_v50 = vpop.xlane.xlu1 %2854  ;;  %v2973_v17 = vrot.slane %v2831_v22, %v5149_v38 }
 0x2d6   : > { %v3005_v13 = vrot.slane %v5135_v50, %v5149_v38 }
 0x2d7   : > { %v3070_v23 = vsel %vm3058_vm4, %v2973_v17, %v3069_v7 }
 0x2d8   : > { %v5137_v63 = vpop.xlane.xlu0 %2878  ;;  %v3077_v50 = vsel %vm3058_vm4, %v3005_v13, %v3076_v36 }
 0x2d9   : > { %v2810_v61 = vpop.xlane.xlu1 %2809  ;;  %v3037_v43 = vrot.slane %v5137_v63, %v5149_v38 }
 0x2da   : > { %v2945_v55 = vrot.slane %v2810_v61, %v5149_v38 }
 0x2dc   : > { %v2834_v2 = vpop.xlane.xlu0 %2833  ;;  %v3061_v27 = vsel %vm3060_vm5, %v2945_v55, %v3059_v52 }
 0x2dd   : > { %v5139_v28 = vpop.xlane.xlu1 %2857  ;;  %v2977_v8 = vrot.slane %v2834_v2, %v5149_v38 }
 0x2de   : > { %v3009_v26 = vrot.slane %v5139_v28, %v5149_v38  ;;  %v3084_v28 = vsel %vm3058_vm4, %v3037_v43, %v3083_v0 }
 0x2df   : > { %v3071_v25 = vsel %vm3060_vm5, %v2977_v8, %v3070_v23 }
 0x2e0   : > { %v5141_v62 = vpop.xlane.xlu0 %2881 }
 0x2e1   : > { %v3041_v29 = vrot.slane %v5141_v62, %v5149_v38  ;;  %v3078_v62 = vsel %vm3060_vm5, %v3009_v26, %v3077_v50 }
 0x2e3   : > { %v2813_v39 = vpop.xlane.xlu1 %2812  ;;  %v3085_v9 = vsel %vm3060_vm5, %v3041_v29, %v3084_v28 }
 0x2e4   : > { %v2837_v51 = vpop.xlane.xlu0 %2836  ;;  %v2949_v12 = vrot.slane %v2813_v39, %v5149_v38 }
 0x2e5   : > { %v2981_v34 = vrot.slane %v2837_v51, %v5149_v38 }
 0x2e6   : > { %v3063_v60 = vsel %vm3062_vm6, %v2949_v12, %v3061_v27 }
 0x2e7   : > { %v5144_v33 = vpop.xlane.xlu1 %2860  ;;  %v3072_v48 = vsel %vm3062_vm6, %v2981_v34, %v3071_v25 }
 0x2e8   : > { %v5146_v14 = vpop.xlane.xlu0 %2884  ;;  %v3013_v44 = vrot.slane %v5144_v33, %v5149_v38 }
 0x2e9   : > { %v3045_v54 = vrot.slane %v5146_v14, %v5149_v38 }
 0x2ea   : > { %v3079_v35 = vsel %vm3062_vm6, %v3013_v44, %v3078_v62 }
 0x2eb   : > { %v3086_v32 = vsel %vm3062_vm6, %v3045_v54, %v3085_v9 }
 0x2ec   : > { %v2816_v5 = vpop.xlane.xlu1 %2815 }
 0x2ed   : > { %v2953_v42 = vrot.slane %v2816_v5, %v5149_v38 }
 0x2ef   : > { %v2840_v4 = vpop.xlane.xlu0 %2839  ;;  %v3065_v49 = vsel %vm3064_vm7, %v2953_v42, %v3063_v60 }
 0x2f0   : > { %v2864_v24 = vpop.xlane.xlu1 %2863  ;;  %v2985_v30 = vrot.slane %v2840_v4, %v5149_v38 }
 0x2f1   : > { %v3017_v37 = vrot.slane %v2864_v24, %v5149_v38 }
 0x2f2   : > { %v3073_v63 = vsel %vm3064_vm7, %v2985_v30, %v3072_v48 }
 0x2f3   : > { %v2888_v46 = vpop.xlane.xlu0 %2887  ;;  %v3080_v5 = vsel %vm3064_vm7, %v3017_v37, %v3079_v35 }
 0x2f4   : > { %v3049_v61 = vrot.slane %v2888_v46, %v5149_v38 }
 0x2f6   : > { %v3087_v53 = vsel %vm3064_vm7, %v3049_v61, %v3086_v32 }
 0x2f7   : > { %v2819_v57 = vpop.xlane.xlu1 %2818 }
 0x2f8   : > { %v2957_v41 = vrot.slane %v2819_v57, %v5149_v38  ;;  %v2843_v59 = vpop.xlane.xlu0 %2842 }
 0x2f9   : > { %v2989_v22 = vrot.slane %v2843_v59, %v5149_v38 }
 0x2fa   : > { %v3067_v2 = vsel %vm3066_vm8, %v2957_v41, %v3065_v49 }
 0x2fb   : > { %3094 = vst.msk [vmem:[%s166_s2] sm:$0xff] %vm3093_vm9, %v3067_v2  ;;  %v3074_v39 = vsel %vm3066_vm8, %v2989_v22, %v3073_v63  ;;  %v2867_v51 = vpop.xlane.xlu1 %2866 }
 0x2fc   : > { %3095 = vst.msk [vmem:[%s166_s2 + $0x8] sm:$0xff] %vm3093_vm9, %v3074_v39  ;;  %v3021_v33 = vrot.slane %v2867_v51, %v5149_v38  ;;  %v2891_v14 = vpop.xlane.xlu0 %2890 }
 0x2fd   : > { %v3053_v3 = vrot.slane %v2891_v14, %v5149_v38 }
 0x2fe   : > { %v3081_v4 = vsel %vm3066_vm8, %v3021_v33, %v3080_v5 }
 0x2ff   : > { %3096 = vst.msk [vmem:[%s166_s2 + $0x10] sm:$0xff] %vm3093_vm9, %v3081_v4  ;;  %v3088_v19 = vsel %vm3066_vm8, %v3053_v3, %v3087_v53 }
 0x300   : > { %3097 = vst.msk [vmem:[%s166_s2 + $0x18] sm:$0xff] %vm3093_vm9, %v3088_v19 }
 0x301   : > { %3341 = shalt.err (!%p3338_p6)
}
 0x302   : > { %s3342_s18 = scalar_lea.hbm %s5223_s12, 512  ;;  %s3346_s26 = scalar_lea.hbm %s5277_s1, 1024 }
 0x303   : > { %p3343_p7 = scmp.ne.s32.totalorder %s5223_s12, %s3342_s18  ;;  %p3347_p13 = scmp.lt.s32.totalorder %s5223_s12, %s5277_s1 }
 0x304   : > { %p3348_p2 = scmp.lt.s32.totalorder %s3346_s26, %s3342_s18 }
 0x305   : > { %p3344_p10 = pnand %p3343_p7, %p3486_p9 }
 0x306   : > { %p3349_p8 = por %p3348_p2, %p3347_p13 }
 0x307   : > { %p3345_p4 = pneg %p3344_p10 }
 0x309   : > { %p3350_p12 = pnand %p3349_p8, %p3345_p4 }
 0x30b   : > { %3353 = shalt.err (!%p3350_p12)
}
 0x30c   : > { %s3423_s29 = smov 128   ;;  %s3424_s30 = smov 8  }
 0x30d   : > { %3227 = dma.vmem_to_hbm [thread:$0]  (%p3486_p9), %s5213_s3, 512, %s5223_s12, %s3099_s13, %s3423_s29, %s3423_s29, %s3424_s30  }
 0x30e PF: > { %s3130_s2 = sand.u32 1, %s3388_s6   ;;  %p5641_p0 = scmp.ge.s32.totalorder %s3408_s11, 2 }
 0x30f   : > { %s3131_s4 = scalar_lea.sflag [#allocation4], %s3130_s2 }
 0x310   : > { %p3234_p1 = pnand %p5641_p0, %p3493_p11 }
 0x312   : > { %p3235_p3 = pneg %p3234_p1 }
 0x314   : > { %3383 = dma.done.wait (%p3235_p3), %s3131_s4, 512  }
 0x315   : > { %3385 = vsyncadd (%p3235_p3), %s3131_s4, 4294966784  ;;  %s17_s11 = sadd.s32 1, %s3408_s11   ;;  %s5642_s6 = smov %s3392_s7 }
 0x316   : > { %p14_p5 = scmp.ge.s32.totalorder %s17_s11, 4   ;;  %s5643_s7 = smov %s3396_s8 }
 0x317   : > { %s5644_s8 = smov %s3491_s20  ;;  %s5645_s9 = smov %s3404_s10 }
 0x318   : > { %s5646_s10 = smov %s5648_s14  ;;  %16 = sbr.rel (!%p14_p5) target bundleno = 6 (0x6), region = 69 }
 0x31d   :  { %3136 = vsyncpa [#allocation3], 1 }
 0x31e   :  { %3138 = vsyncpa [#allocation3 + $0x1], 1 }
 0x31f   :  { %3139 = vsyncpa [#allocation4], 1 }
 0x320   :  { %3141 = vsyncpa [#allocation4 + $0x1], 1 }

</bundles_post_ra>
